<compile_context>
chip_gen: v7x
topology: tpu7x:2x2x1
jax: 0.10.0
libtpu: 0.0.40
codegen_flags: <defaults>
</compile_context>

<pallas_src>
import math

import jax
import jax.numpy as jnp
from jax.experimental import pallas as pl
from jax.experimental.pallas import tpu as pltpu


def _nlinear_kernel(x_ref, w_ref, b_ref, o_ref):
    # x_ref: (bb, bn, d_in)      -- bb batch rows, bn feature slots
    # w_ref: (bn, d_out, d_in)   -- native PyTorch layout, no transpose in HBM
    # b_ref: (bn, d_out)
    # o_ref: (bb, bn * d_out)    -- lane-dense store
    bn = w_ref.shape[0]
    xb = x_ref[...]
    wb = w_ref[...]
    bias = b_ref[...].astype(jnp.float32)

    pieces = []
    for j in range(bn):  # static unroll over the feature slots in this block
        xj = xb[:, j, :]                     # (bb, d_in)
        wj = wb[j]                           # (d_out, d_in)
        acc = jax.lax.dot_general(           # x @ W.T with f32 accumulation
            xj, wj,
            dimension_numbers=(((1,), (1,)), ((), ())),
            preferred_element_type=jnp.float32,
        )                                    # (bb, d_out)
        pieces.append(acc + bias[j:j + 1, :])
    # Concatenate the bn per-slot results along the lane axis -> one
    # full-width (bb, bn*d_out) store instead of bn masked narrow stores.
    o_ref[...] = jnp.concatenate(pieces, axis=-1).astype(o_ref.dtype)


def _pick_block_n(n, d_out, sublane):
    """Feature-block size bn: divides n, multiple of the sublane requirement,
    and bn*d_out a multiple of 128 (lane-dense output), capped so the unrolled
    inner loop / VMEM footprint stay small."""
    lane_req = 128 // math.gcd(d_out, 128)                       # for lane-dense out
    base = sublane * lane_req // math.gcd(sublane, lane_req)     # lcm(sublane, lane_req)
    candidates = [bn for bn in range(base, min(n, 64) + 1, base) if n % bn == 0]
    if not candidates:
        # Whole feature axis in one block: full-dim blocks are exempt from the
        # (8, 128) tiling rule.
        return n
    multi_step = [bn for bn in candidates if n // bn >= 2]       # keep >=2 grid steps
    return max(multi_step) if multi_step else max(candidates)


def _pick_block_b(B, max_bb=512):
    """Batch tile: full B when small, else a multiple of 8 that divides B so the
    double-buffered working set stays bounded (sized for v7x's 64 MiB VMEM)."""
    if B <= max_bb:
        return B
    for bb in range(max_bb - (max_bb % 8), 0, -8):
        if B % bb == 0:
            return bb
    return B


def nlinear_memory_efficient(x, weight, bias, *, compute_dtype=None):
    """x: [B, n, d_in]; weight: [n, d_out, d_in] (native nn.Linear layout);
    bias: [n, d_out].  Returns [B, n, d_out] (matches the PyTorch forward)."""
    B, n, d_in = x.shape
    n_w, d_out, d_in_w = weight.shape
    assert (n_w, d_in_w) == (n, d_in) and bias.shape == (n, d_out)

    out_dtype = x.dtype
    if compute_dtype is not None:  # e.g. jnp.bfloat16: halves HBM traffic, f32 accum
        x = x.astype(compute_dtype)
        weight = weight.astype(compute_dtype)

    sublane = max(8, 32 // jnp.dtype(x.dtype).itemsize)  # 8 for f32, 16 for bf16
    bn = _pick_block_n(n, d_out, sublane)
    bb = _pick_block_b(B)

    if bn > 64:
        # Awkward n (no small block divisor) would force a huge unrolled kernel;
        # a fused XLA einsum is the better tool for that corner case.
        out = jnp.einsum("bni,noi->bno", x, weight,
                         preferred_element_type=jnp.float32)
        return (out + bias[None, :, :]).astype(out_dtype)

    grid = (B // bb, n // bn)

    # Explicit VMEM budget (double-buffered blocks) -> set the scoped limit.
    def _bytes(shape, dtype):
        return math.prod(shape) * jnp.dtype(dtype).itemsize

    blk_bytes = (_bytes((bb, bn, d_in), x.dtype)
                 + _bytes((bn, d_out, d_in), weight.dtype)
                 + _bytes((bn, d_out), bias.dtype)
                 + _bytes((bb, bn * d_out), out_dtype))
    vmem_limit = int(min(64 * 1024 * 1024,                 # v7x physical VMEM
                         max(32 * 1024 * 1024, 3 * blk_bytes)))

    cost = pl.CostEstimate(
        flops=2 * B * n * d_in * d_out,
        transcendentals=0,
        bytes_accessed=(x.size * x.dtype.itemsize
                        + weight.size * weight.dtype.itemsize
                        + bias.size * bias.dtype.itemsize
                        + B * n * d_out * jnp.dtype(out_dtype).itemsize),
    )

    out_flat = pl.pallas_call(
        _nlinear_kernel,
        out_shape=jax.ShapeDtypeStruct((B, n * d_out), out_dtype),
        grid=grid,
        in_specs=[
            pl.BlockSpec((bb, bn, d_in), lambda bi, ni: (bi, ni, 0)),
            pl.BlockSpec((bn, d_out, d_in), lambda bi, ni: (ni, 0, 0)),
            pl.BlockSpec((bn, d_out), lambda bi, ni: (ni, 0)),
        ],
        out_specs=pl.BlockSpec((bb, bn * d_out), lambda bi, ni: (bi, ni)),
        compiler_params=pltpu.CompilerParams(
            dimension_semantics=("parallel", "parallel"),
            vmem_limit_bytes=vmem_limit,
        ),
        cost_estimate=cost,
    )(x, weight, bias)

    # Free (contiguous) reshape of the [B, n*d_out] slab back to [B, n, d_out].
    return out_flat.reshape(B, n, d_out)


if __name__ == "__main__":
    # Small shapes consistent with the module's forward.
    B, n, d_in, d_out = 16, 32, 16, 32

    key = jax.random.PRNGKey(0)
    kx, kw, kb = jax.random.split(key, 3)

    x = jax.random.normal(kx, (B, n, d_in), dtype=jnp.float32)

    # Deterministic parameter init mimicking nn.Linear's U(-1/sqrt(d_in), 1/sqrt(d_in)).
    bound = 1.0 / math.sqrt(d_in)
    weight = jax.random.uniform(kw, (n, d_out, d_in), jnp.float32, -bound, bound)
    bias = jax.random.uniform(kb, (n, d_out), jnp.float32, -bound, bound)

    out = nlinear_memory_efficient(x, weight, bias)
    out = jax.block_until_ready(out)

    # Pure-JAX reference (same semantics as the PyTorch forward).
    ref = jnp.einsum("bni,noi->bno", x, weight) + bias[None, :, :]
    assert out.shape == (B, n, d_out)
    assert jnp.allclose(out, ref, atol=1e-4, rtol=1e-4), float(jnp.max(jnp.abs(out - ref)))

    print("KERNEL_OK")
</pallas_src>

<mosaic_0001>
module attributes {stable_mosaic.version = 11 : i64} {
  func.func @_nlinear_kernel(%arg0: i32, %arg1: i32, %arg2: memref<16x16x16xf32, #tpu.memory_space<vmem>>, %arg3: memref<16x32x16xf32, #tpu.memory_space<vmem>>, %arg4: memref<16x32xf32, #tpu.memory_space<vmem>>, %arg5: memref<16x512xf32, #tpu.memory_space<vmem>>) attributes {dimension_semantics = [#tpu.dimension_semantics<parallel>, #tpu.dimension_semantics<parallel>], iteration_bounds = array<i64: 1, 2>, scalar_prefetch = 0 : i64, scratch_operands = 0 : i64, tpu.core_type = #tpu.core_type<tc>, window_params = [{transform_indices = @transform_0, window_bounds = array<i64: 16, 16, 16>}, {transform_indices = @transform_1, window_bounds = array<i64: 16, 32, 16>}, {transform_indices = @transform_2, window_bounds = array<i64: 16, 32>}, {transform_indices = @transform_3, window_bounds = array<i64: 16, 512>}]} {
    %c0 = arith.constant 0 : index
    %c0_0 = arith.constant 0 : index
    %c0_1 = arith.constant 0 : index
    %0 = vector.load %arg2[%c0, %c0_0, %c0_1] : memref<16x16x16xf32, #tpu.memory_space<vmem>>, vector<16x16x16xf32>
    %c0_2 = arith.constant 0 : index
    %c0_3 = arith.constant 0 : index
    %c0_4 = arith.constant 0 : index
    %1 = vector.load %arg3[%c0_2, %c0_3, %c0_4] : memref<16x32x16xf32, #tpu.memory_space<vmem>>, vector<16x32x16xf32>
    %c0_5 = arith.constant 0 : index
    %c0_6 = arith.constant 0 : index
    %2 = vector.load %arg4[%c0_5, %c0_6] : memref<16x32xf32, #tpu.memory_space<vmem>>, vector<16x32xf32>
    %3 = vector.extract_strided_slice %0 {offsets = [0, 0, 0], sizes = [16, 1, 16], strides = [1, 1, 1]} : vector<16x16x16xf32> to vector<16x1x16xf32>
    %4 = vector.shape_cast %3 : vector<16x1x16xf32> to vector<16x16xf32>
    %5 = vector.extract_strided_slice %1 {offsets = [0, 0, 0], sizes = [1, 32, 16], strides = [1, 1, 1]} : vector<16x32x16xf32> to vector<1x32x16xf32>
    %6 = vector.shape_cast %5 : vector<1x32x16xf32> to vector<32x16xf32>
    %cst = arith.constant dense<0.000000e+00> : vector<16x32xf32>
    %7 = tpu.matmul %4, %6, %cst {dimension_numbers = #tpu.dot_dimension_numbers<[1], [1], [0], [0], [0, 0, 1, 0], [], []>} : vector<16x16xf32>, vector<32x16xf32>, vector<16x32xf32> -> vector<16x32xf32>
    %8 = vector.extract_strided_slice %2 {offsets = [0, 0], sizes = [1, 32], strides = [1, 1]} : vector<16x32xf32> to vector<1x32xf32>
    %9 = vector.broadcast %8 : vector<1x32xf32> to vector<16x32xf32>
    %10 = arith.addf %7, %9 : vector<16x32xf32>
    %11 = vector.extract_strided_slice %0 {offsets = [0, 1, 0], sizes = [16, 1, 16], strides = [1, 1, 1]} : vector<16x16x16xf32> to vector<16x1x16xf32>
    %12 = vector.shape_cast %11 : vector<16x1x16xf32> to vector<16x16xf32>
    %13 = vector.extract_strided_slice %1 {offsets = [1, 0, 0], sizes = [1, 32, 16], strides = [1, 1, 1]} : vector<16x32x16xf32> to vector<1x32x16xf32>
    %14 = vector.shape_cast %13 : vector<1x32x16xf32> to vector<32x16xf32>
    %cst_7 = arith.constant dense<0.000000e+00> : vector<16x32xf32>
    %15 = tpu.matmul %12, %14, %cst_7 {dimension_numbers = #tpu.dot_dimension_numbers<[1], [1], [0], [0], [0, 0, 1, 0], [], []>} : vector<16x16xf32>, vector<32x16xf32>, vector<16x32xf32> -> vector<16x32xf32>
    %16 = vector.extract_strided_slice %2 {offsets = [1, 0], sizes = [1, 32], strides = [1, 1]} : vector<16x32xf32> to vector<1x32xf32>
    %17 = vector.broadcast %16 : vector<1x32xf32> to vector<16x32xf32>
    %18 = arith.addf %15, %17 : vector<16x32xf32>
    %19 = vector.extract_strided_slice %0 {offsets = [0, 2, 0], sizes = [16, 1, 16], strides = [1, 1, 1]} : vector<16x16x16xf32> to vector<16x1x16xf32>
    %20 = vector.shape_cast %19 : vector<16x1x16xf32> to vector<16x16xf32>
    %21 = vector.extract_strided_slice %1 {offsets = [2, 0, 0], sizes = [1, 32, 16], strides = [1, 1, 1]} : vector<16x32x16xf32> to vector<1x32x16xf32>
    %22 = vector.shape_cast %21 : vector<1x32x16xf32> to vector<32x16xf32>
    %cst_8 = arith.constant dense<0.000000e+00> : vector<16x32xf32>
    %23 = tpu.matmul %20, %22, %cst_8 {dimension_numbers = #tpu.dot_dimension_numbers<[1], [1], [0], [0], [0, 0, 1, 0], [], []>} : vector<16x16xf32>, vector<32x16xf32>, vector<16x32xf32> -> vector<16x32xf32>
    %24 = vector.extract_strided_slice %2 {offsets = [2, 0], sizes = [1, 32], strides = [1, 1]} : vector<16x32xf32> to vector<1x32xf32>
    %25 = vector.broadcast %24 : vector<1x32xf32> to vector<16x32xf32>
    %26 = arith.addf %23, %25 : vector<16x32xf32>
    %27 = vector.extract_strided_slice %0 {offsets = [0, 3, 0], sizes = [16, 1, 16], strides = [1, 1, 1]} : vector<16x16x16xf32> to vector<16x1x16xf32>
    %28 = vector.shape_cast %27 : vector<16x1x16xf32> to vector<16x16xf32>
    %29 = vector.extract_strided_slice %1 {offsets = [3, 0, 0], sizes = [1, 32, 16], strides = [1, 1, 1]} : vector<16x32x16xf32> to vector<1x32x16xf32>
    %30 = vector.shape_cast %29 : vector<1x32x16xf32> to vector<32x16xf32>
    %cst_9 = arith.constant dense<0.000000e+00> : vector<16x32xf32>
    %31 = tpu.matmul %28, %30, %cst_9 {dimension_numbers = #tpu.dot_dimension_numbers<[1], [1], [0], [0], [0, 0, 1, 0], [], []>} : vector<16x16xf32>, vector<32x16xf32>, vector<16x32xf32> -> vector<16x32xf32>
    %32 = vector.extract_strided_slice %2 {offsets = [3, 0], sizes = [1, 32], strides = [1, 1]} : vector<16x32xf32> to vector<1x32xf32>
    %33 = vector.broadcast %32 : vector<1x32xf32> to vector<16x32xf32>
    %34 = arith.addf %31, %33 : vector<16x32xf32>
    %35 = vector.extract_strided_slice %0 {offsets = [0, 4, 0], sizes = [16, 1, 16], strides = [1, 1, 1]} : vector<16x16x16xf32> to vector<16x1x16xf32>
    %36 = vector.shape_cast %35 : vector<16x1x16xf32> to vector<16x16xf32>
    %37 = vector.extract_strided_slice %1 {offsets = [4, 0, 0], sizes = [1, 32, 16], strides = [1, 1, 1]} : vector<16x32x16xf32> to vector<1x32x16xf32>
    %38 = vector.shape_cast %37 : vector<1x32x16xf32> to vector<32x16xf32>
    %cst_10 = arith.constant dense<0.000000e+00> : vector<16x32xf32>
    %39 = tpu.matmul %36, %38, %cst_10 {dimension_numbers = #tpu.dot_dimension_numbers<[1], [1], [0], [0], [0, 0, 1, 0], [], []>} : vector<16x16xf32>, vector<32x16xf32>, vector<16x32xf32> -> vector<16x32xf32>
    %40 = vector.extract_strided_slice %2 {offsets = [4, 0], sizes = [1, 32], strides = [1, 1]} : vector<16x32xf32> to vector<1x32xf32>
    %41 = vector.broadcast %40 : vector<1x32xf32> to vector<16x32xf32>
    %42 = arith.addf %39, %41 : vector<16x32xf32>
    %43 = vector.extract_strided_slice %0 {offsets = [0, 5, 0], sizes = [16, 1, 16], strides = [1, 1, 1]} : vector<16x16x16xf32> to vector<16x1x16xf32>
    %44 = vector.shape_cast %43 : vector<16x1x16xf32> to vector<16x16xf32>
    %45 = vector.extract_strided_slice %1 {offsets = [5, 0, 0], sizes = [1, 32, 16], strides = [1, 1, 1]} : vector<16x32x16xf32> to vector<1x32x16xf32>
    %46 = vector.shape_cast %45 : vector<1x32x16xf32> to vector<32x16xf32>
    %cst_11 = arith.constant dense<0.000000e+00> : vector<16x32xf32>
    %47 = tpu.matmul %44, %46, %cst_11 {dimension_numbers = #tpu.dot_dimension_numbers<[1], [1], [0], [0], [0, 0, 1, 0], [], []>} : vector<16x16xf32>, vector<32x16xf32>, vector<16x32xf32> -> vector<16x32xf32>
    %48 = vector.extract_strided_slice %2 {offsets = [5, 0], sizes = [1, 32], strides = [1, 1]} : vector<16x32xf32> to vector<1x32xf32>
    %49 = vector.broadcast %48 : vector<1x32xf32> to vector<16x32xf32>
    %50 = arith.addf %47, %49 : vector<16x32xf32>
    %51 = vector.extract_strided_slice %0 {offsets = [0, 6, 0], sizes = [16, 1, 16], strides = [1, 1, 1]} : vector<16x16x16xf32> to vector<16x1x16xf32>
    %52 = vector.shape_cast %51 : vector<16x1x16xf32> to vector<16x16xf32>
    %53 = vector.extract_strided_slice %1 {offsets = [6, 0, 0], sizes = [1, 32, 16], strides = [1, 1, 1]} : vector<16x32x16xf32> to vector<1x32x16xf32>
    %54 = vector.shape_cast %53 : vector<1x32x16xf32> to vector<32x16xf32>
    %cst_12 = arith.constant dense<0.000000e+00> : vector<16x32xf32>
    %55 = tpu.matmul %52, %54, %cst_12 {dimension_numbers = #tpu.dot_dimension_numbers<[1], [1], [0], [0], [0, 0, 1, 0], [], []>} : vector<16x16xf32>, vector<32x16xf32>, vector<16x32xf32> -> vector<16x32xf32>
    %56 = vector.extract_strided_slice %2 {offsets = [6, 0], sizes = [1, 32], strides = [1, 1]} : vector<16x32xf32> to vector<1x32xf32>
    %57 = vector.broadcast %56 : vector<1x32xf32> to vector<16x32xf32>
    %58 = arith.addf %55, %57 : vector<16x32xf32>
    %59 = vector.extract_strided_slice %0 {offsets = [0, 7, 0], sizes = [16, 1, 16], strides = [1, 1, 1]} : vector<16x16x16xf32> to vector<16x1x16xf32>
    %60 = vector.shape_cast %59 : vector<16x1x16xf32> to vector<16x16xf32>
    %61 = vector.extract_strided_slice %1 {offsets = [7, 0, 0], sizes = [1, 32, 16], strides = [1, 1, 1]} : vector<16x32x16xf32> to vector<1x32x16xf32>
    %62 = vector.shape_cast %61 : vector<1x32x16xf32> to vector<32x16xf32>
    %cst_13 = arith.constant dense<0.000000e+00> : vector<16x32xf32>
    %63 = tpu.matmul %60, %62, %cst_13 {dimension_numbers = #tpu.dot_dimension_numbers<[1], [1], [0], [0], [0, 0, 1, 0], [], []>} : vector<16x16xf32>, vector<32x16xf32>, vector<16x32xf32> -> vector<16x32xf32>
    %64 = vector.extract_strided_slice %2 {offsets = [7, 0], sizes = [1, 32], strides = [1, 1]} : vector<16x32xf32> to vector<1x32xf32>
    %65 = vector.broadcast %64 : vector<1x32xf32> to vector<16x32xf32>
    %66 = arith.addf %63, %65 : vector<16x32xf32>
    %67 = vector.extract_strided_slice %0 {offsets = [0, 8, 0], sizes = [16, 1, 16], strides = [1, 1, 1]} : vector<16x16x16xf32> to vector<16x1x16xf32>
    %68 = vector.shape_cast %67 : vector<16x1x16xf32> to vector<16x16xf32>
    %69 = vector.extract_strided_slice %1 {offsets = [8, 0, 0], sizes = [1, 32, 16], strides = [1, 1, 1]} : vector<16x32x16xf32> to vector<1x32x16xf32>
    %70 = vector.shape_cast %69 : vector<1x32x16xf32> to vector<32x16xf32>
    %cst_14 = arith.constant dense<0.000000e+00> : vector<16x32xf32>
    %71 = tpu.matmul %68, %70, %cst_14 {dimension_numbers = #tpu.dot_dimension_numbers<[1], [1], [0], [0], [0, 0, 1, 0], [], []>} : vector<16x16xf32>, vector<32x16xf32>, vector<16x32xf32> -> vector<16x32xf32>
    %72 = vector.extract_strided_slice %2 {offsets = [8, 0], sizes = [1, 32], strides = [1, 1]} : vector<16x32xf32> to vector<1x32xf32>
    %73 = vector.broadcast %72 : vector<1x32xf32> to vector<16x32xf32>
    %74 = arith.addf %71, %73 : vector<16x32xf32>
    %75 = vector.extract_strided_slice %0 {offsets = [0, 9, 0], sizes = [16, 1, 16], strides = [1, 1, 1]} : vector<16x16x16xf32> to vector<16x1x16xf32>
    %76 = vector.shape_cast %75 : vector<16x1x16xf32> to vector<16x16xf32>
    %77 = vector.extract_strided_slice %1 {offsets = [9, 0, 0], sizes = [1, 32, 16], strides = [1, 1, 1]} : vector<16x32x16xf32> to vector<1x32x16xf32>
    %78 = vector.shape_cast %77 : vector<1x32x16xf32> to vector<32x16xf32>
    %cst_15 = arith.constant dense<0.000000e+00> : vector<16x32xf32>
    %79 = tpu.matmul %76, %78, %cst_15 {dimension_numbers = #tpu.dot_dimension_numbers<[1], [1], [0], [0], [0, 0, 1, 0], [], []>} : vector<16x16xf32>, vector<32x16xf32>, vector<16x32xf32> -> vector<16x32xf32>
    %80 = vector.extract_strided_slice %2 {offsets = [9, 0], sizes = [1, 32], strides = [1, 1]} : vector<16x32xf32> to vector<1x32xf32>
    %81 = vector.broadcast %80 : vector<1x32xf32> to vector<16x32xf32>
    %82 = arith.addf %79, %81 : vector<16x32xf32>
    %83 = vector.extract_strided_slice %0 {offsets = [0, 10, 0], sizes = [16, 1, 16], strides = [1, 1, 1]} : vector<16x16x16xf32> to vector<16x1x16xf32>
    %84 = vector.shape_cast %83 : vector<16x1x16xf32> to vector<16x16xf32>
    %85 = vector.extract_strided_slice %1 {offsets = [10, 0, 0], sizes = [1, 32, 16], strides = [1, 1, 1]} : vector<16x32x16xf32> to vector<1x32x16xf32>
    %86 = vector.shape_cast %85 : vector<1x32x16xf32> to vector<32x16xf32>
    %cst_16 = arith.constant dense<0.000000e+00> : vector<16x32xf32>
    %87 = tpu.matmul %84, %86, %cst_16 {dimension_numbers = #tpu.dot_dimension_numbers<[1], [1], [0], [0], [0, 0, 1, 0], [], []>} : vector<16x16xf32>, vector<32x16xf32>, vector<16x32xf32> -> vector<16x32xf32>
    %88 = vector.extract_strided_slice %2 {offsets = [10, 0], sizes = [1, 32], strides = [1, 1]} : vector<16x32xf32> to vector<1x32xf32>
    %89 = vector.broadcast %88 : vector<1x32xf32> to vector<16x32xf32>
    %90 = arith.addf %87, %89 : vector<16x32xf32>
    %91 = vector.extract_strided_slice %0 {offsets = [0, 11, 0], sizes = [16, 1, 16], strides = [1, 1, 1]} : vector<16x16x16xf32> to vector<16x1x16xf32>
    %92 = vector.shape_cast %91 : vector<16x1x16xf32> to vector<16x16xf32>
    %93 = vector.extract_strided_slice %1 {offsets = [11, 0, 0], sizes = [1, 32, 16], strides = [1, 1, 1]} : vector<16x32x16xf32> to vector<1x32x16xf32>
    %94 = vector.shape_cast %93 : vector<1x32x16xf32> to vector<32x16xf32>
    %cst_17 = arith.constant dense<0.000000e+00> : vector<16x32xf32>
    %95 = tpu.matmul %92, %94, %cst_17 {dimension_numbers = #tpu.dot_dimension_numbers<[1], [1], [0], [0], [0, 0, 1, 0], [], []>} : vector<16x16xf32>, vector<32x16xf32>, vector<16x32xf32> -> vector<16x32xf32>
    %96 = vector.extract_strided_slice %2 {offsets = [11, 0], sizes = [1, 32], strides = [1, 1]} : vector<16x32xf32> to vector<1x32xf32>
    %97 = vector.broadcast %96 : vector<1x32xf32> to vector<16x32xf32>
    %98 = arith.addf %95, %97 : vector<16x32xf32>
    %99 = vector.extract_strided_slice %0 {offsets = [0, 12, 0], sizes = [16, 1, 16], strides = [1, 1, 1]} : vector<16x16x16xf32> to vector<16x1x16xf32>
    %100 = vector.shape_cast %99 : vector<16x1x16xf32> to vector<16x16xf32>
    %101 = vector.extract_strided_slice %1 {offsets = [12, 0, 0], sizes = [1, 32, 16], strides = [1, 1, 1]} : vector<16x32x16xf32> to vector<1x32x16xf32>
    %102 = vector.shape_cast %101 : vector<1x32x16xf32> to vector<32x16xf32>
    %cst_18 = arith.constant dense<0.000000e+00> : vector<16x32xf32>
    %103 = tpu.matmul %100, %102, %cst_18 {dimension_numbers = #tpu.dot_dimension_numbers<[1], [1], [0], [0], [0, 0, 1, 0], [], []>} : vector<16x16xf32>, vector<32x16xf32>, vector<16x32xf32> -> vector<16x32xf32>
    %104 = vector.extract_strided_slice %2 {offsets = [12, 0], sizes = [1, 32], strides = [1, 1]} : vector<16x32xf32> to vector<1x32xf32>
    %105 = vector.broadcast %104 : vector<1x32xf32> to vector<16x32xf32>
    %106 = arith.addf %103, %105 : vector<16x32xf32>
    %107 = vector.extract_strided_slice %0 {offsets = [0, 13, 0], sizes = [16, 1, 16], strides = [1, 1, 1]} : vector<16x16x16xf32> to vector<16x1x16xf32>
    %108 = vector.shape_cast %107 : vector<16x1x16xf32> to vector<16x16xf32>
    %109 = vector.extract_strided_slice %1 {offsets = [13, 0, 0], sizes = [1, 32, 16], strides = [1, 1, 1]} : vector<16x32x16xf32> to vector<1x32x16xf32>
    %110 = vector.shape_cast %109 : vector<1x32x16xf32> to vector<32x16xf32>
    %cst_19 = arith.constant dense<0.000000e+00> : vector<16x32xf32>
    %111 = tpu.matmul %108, %110, %cst_19 {dimension_numbers = #tpu.dot_dimension_numbers<[1], [1], [0], [0], [0, 0, 1, 0], [], []>} : vector<16x16xf32>, vector<32x16xf32>, vector<16x32xf32> -> vector<16x32xf32>
    %112 = vector.extract_strided_slice %2 {offsets = [13, 0], sizes = [1, 32], strides = [1, 1]} : vector<16x32xf32> to vector<1x32xf32>
    %113 = vector.broadcast %112 : vector<1x32xf32> to vector<16x32xf32>
    %114 = arith.addf %111, %113 : vector<16x32xf32>
    %115 = vector.extract_strided_slice %0 {offsets = [0, 14, 0], sizes = [16, 1, 16], strides = [1, 1, 1]} : vector<16x16x16xf32> to vector<16x1x16xf32>
    %116 = vector.shape_cast %115 : vector<16x1x16xf32> to vector<16x16xf32>
    %117 = vector.extract_strided_slice %1 {offsets = [14, 0, 0], sizes = [1, 32, 16], strides = [1, 1, 1]} : vector<16x32x16xf32> to vector<1x32x16xf32>
    %118 = vector.shape_cast %117 : vector<1x32x16xf32> to vector<32x16xf32>
    %cst_20 = arith.constant dense<0.000000e+00> : vector<16x32xf32>
    %119 = tpu.matmul %116, %118, %cst_20 {dimension_numbers = #tpu.dot_dimension_numbers<[1], [1], [0], [0], [0, 0, 1, 0], [], []>} : vector<16x16xf32>, vector<32x16xf32>, vector<16x32xf32> -> vector<16x32xf32>
    %120 = vector.extract_strided_slice %2 {offsets = [14, 0], sizes = [1, 32], strides = [1, 1]} : vector<16x32xf32> to vector<1x32xf32>
    %121 = vector.broadcast %120 : vector<1x32xf32> to vector<16x32xf32>
    %122 = arith.addf %119, %121 : vector<16x32xf32>
    %123 = vector.extract_strided_slice %0 {offsets = [0, 15, 0], sizes = [16, 1, 16], strides = [1, 1, 1]} : vector<16x16x16xf32> to vector<16x1x16xf32>
    %124 = vector.shape_cast %123 : vector<16x1x16xf32> to vector<16x16xf32>
    %125 = vector.extract_strided_slice %1 {offsets = [15, 0, 0], sizes = [1, 32, 16], strides = [1, 1, 1]} : vector<16x32x16xf32> to vector<1x32x16xf32>
    %126 = vector.shape_cast %125 : vector<1x32x16xf32> to vector<32x16xf32>
    %cst_21 = arith.constant dense<0.000000e+00> : vector<16x32xf32>
    %127 = tpu.matmul %124, %126, %cst_21 {dimension_numbers = #tpu.dot_dimension_numbers<[1], [1], [0], [0], [0, 0, 1, 0], [], []>} : vector<16x16xf32>, vector<32x16xf32>, vector<16x32xf32> -> vector<16x32xf32>
    %128 = vector.extract_strided_slice %2 {offsets = [15, 0], sizes = [1, 32], strides = [1, 1]} : vector<16x32xf32> to vector<1x32xf32>
    %129 = vector.broadcast %128 : vector<1x32xf32> to vector<16x32xf32>
    %130 = arith.addf %127, %129 : vector<16x32xf32>
    %131 = tpu.concatenate %10, %18, %26, %34, %42, %50, %58, %66, %74, %82, %90, %98, %106, %114, %122, %130 in 1 : vector<16x32xf32>, vector<16x32xf32>, vector<16x32xf32>, vector<16x32xf32>, vector<16x32xf32>, vector<16x32xf32>, vector<16x32xf32>, vector<16x32xf32>, vector<16x32xf32>, vector<16x32xf32>, vector<16x32xf32>, vector<16x32xf32>, vector<16x32xf32>, vector<16x32xf32>, vector<16x32xf32>, vector<16x32xf32> -> vector<16x512xf32>
    %c0_22 = arith.constant 0 : index
    %c0_23 = arith.constant 0 : index
    %132 = vector.load %arg5[%c0_22, %c0_23] : memref<16x512xf32, #tpu.memory_space<vmem>>, vector<16x512xf32>
    tpu.vector_store %arg5[%c0_22, %c0_23], %131 {strides = array<i32>} : memref<16x512xf32, #tpu.memory_space<vmem>>, vector<16x512xf32>,
    return
  }
  func.func @transform_0(%arg0: i32, %arg1: i32) -> (i32, i32, i32) {
    %c0_i32 = arith.constant 0 : i32
    %c0_i32_0 = arith.constant 0 : i32
    return %arg0, %arg1, %c0_i32 : i32, i32, i32
  }
  func.func @transform_1(%arg0: i32, %arg1: i32) -> (i32, i32, i32) {
    %c0_i32 = arith.constant 0 : i32
    %c0_i32_0 = arith.constant 0 : i32
    %c0_i32_1 = arith.constant 0 : i32
    return %arg1, %c0_i32, %c0_i32_0 : i32, i32, i32
  }
  func.func @transform_2(%arg0: i32, %arg1: i32) -> (i32, i32) {
    %c0_i32 = arith.constant 0 : i32
    %c0_i32_0 = arith.constant 0 : i32
    return %arg1, %c0_i32 : i32, i32
  }
  func.func @transform_3(%arg0: i32, %arg1: i32) -> (i32, i32) {
    %c0_i32 = arith.constant 0 : i32
    return %arg0, %arg1 : i32, i32
  }
}

</mosaic_0001>

<bundles_post_ra>
// kernel: tpu_custom_call.1
= control target key start
LH: loop header
LB: loop body
LE: loop exit
PB: predicated region body
PF: predicated region fallthrough
CT: control target
= control target key end

     0   :  { %8 = vsyncpa [#allocation4], 0  ;;  %s4744_s0 = inlined_call_operand.vmem [shape: f32[16,32,16], index: 0, kind: input, shape index: {}]   ;;  %s4745_s1 = inlined_call_operand.vmem [shape: f32[32,32,16], index: 1, kind: input, shape index: {}]   ;;  %s4746_s2 = inlined_call_operand.vmem [shape: f32[32,32], index: 2, kind: input, shape index: {}]   ;;  %s4747_s3 = inlined_call_operand.hbm [shape: f32[16,1024], index: 3, kind: output, shape index: {}]  }
   0x1   :  { %10 = vsyncpa [#allocation4 + $0x1], 0  ;;  %s3507_s12 = smov 0   ;;  %s3509_s13 = smov 0  }
   0x2   :  { %s3511_s14 = smov 0   ;;  %s3513_s15 = smov 0  }
   0x3   :  { %s3515_s16 = smov 0   ;;  %s3517_s17 = smov 0  }
   0x4 LB: > { %s2758_s18 = sadd.s32 4294967295, %s3479_s17   ;;  %s2759_s19 = sadd.s32 4294967294, %s3479_s17   ;;  %s3479_s17 = sphi %s3517_s17, %s16_s17   ;;  %s3475_s16 = sphi %s3515_s16, %s4757_s16   ;;  %s3471_s15 = sphi %s3513_s15, %s4756_s15   ;;  %s3467_s14 = sphi %s3511_s14, %s4755_s14   ;;  %s3463_s13 = sphi %s3509_s13, %s4754_s13   ;;  %s3459_s12 = sphi %s3507_s12, %s4753_s12  }
   0x5   : > { %s25_s20 = sadd.s32 1, %s3475_s16  ;;  %s37_s21 = sadd.s32 1, %s3467_s14 }
   0x6   : > { %p26_p0 = scmp.ge.s32.totalorder %s25_s20, 2  ;;  %p44_p1 = scmp.ne.s32.totalorder %s3467_s14, %s3463_s13 }
   0x7   : > { %p45_p2 = scmp.eq.s32.totalorder %s3479_s17, 0  ;;  %p128_p3 = scmp.eq.s32.totalorder %s2758_s18, 1 }
   0x8   : > { %s4759_s20 = smov (%p26_p0, %s25_s20), 0  ;;  %p133_p6 = scmp.ne.s32.totalorder %s3463_s13, %s3459_s12 }
   0x9   : > { %p46_p4 = por %p45_p2, %p44_p1  ;;  %p3546_p5 = por %p128_p3, %p44_p1 }
   0xa   : > { %s33_s23 = ssub.s32 %s3475_s16, %s4759_s20  ;;  %p134_p8 = scmp.eq.s32.totalorder %s2759_s19, 1 }
   0xb   : > { %p35_p7 = scmp.eq.s32.totalorder %s33_s23, 0  ;;  %p2761_p10 = scmp.ge.s32.totalorder %s3479_s17, 2 }
   0xc   : > { %p3557_p9 = por %p134_p8, %p133_p6 }
   0xd   : > { %s3555_s24 = scalar_select %p35_p7, %s3467_s14, %s37_s21  }
   0xe   : > { %150 = sbr.rel (%p2761_p10) target bundleno = 41 (0x29), region = 16 }
  0x15   : > { %153 = sbr.rel (!%p46_p4) target bundleno = 41 (0x29), region = 20  ;;  %s155_s26 = sand.u32 (%p46_p4), 1, %s3467_s14  }
  0x16   : > { %s2874_s27 = sshll.u32 (%p46_p4), %s3475_s16, 4  ;;  %s2762_s28 = sshll.u32 (%p46_p4), %s155_s26, 8 }
  0x17   : > { %s3569_s4 = scalar_lea.vmem (%p46_p4), %s4744_s0, %s2874_s27  ;;  %s3574_s5 = scalar_lea.vmem (%p46_p4), [#allocation2], %s2762_s28 }
  0x18   : > { %v253_v0 = vld [vmem:[%s3569_s4] sm:$0xff] (%p46_p4)  ;;  %v255_v1 = vld [vmem:[%s3569_s4 + $0x8] sm:$0xff] (%p46_p4) }
  0x19   : > { %v257_v2 = vld [vmem:[%s3569_s4 + $0x20] sm:$0xff] (%p46_p4)  ;;  %254 = vst [vmem:[%s3574_s5] sm:$0xff] (%p46_p4), %v253_v0  ;;  %256 = vst [vmem:[%s3574_s5 + $0x8] sm:$0xff] (%p46_p4), %v255_v1  ;;  %v259_v3 = vld [vmem:[%s3569_s4 + $0x28] sm:$0xff] (%p46_p4) }
  0x1a   : > { %258 = vst [vmem:[%s3574_s5 + $0x10] sm:$0xff] (%p46_p4), %v257_v2  ;;  %v261_v4 = vld [vmem:[%s3569_s4 + $0x40] sm:$0xff] (%p46_p4)  ;;  %v263_v5 = vld [vmem:[%s3569_s4 + $0x48] sm:$0xff] (%p46_p4)  ;;  %260 = vst [vmem:[%s3574_s5 + $0x18] sm:$0xff] (%p46_p4), %v259_v3 }
  0x1b   : > { %262 = vst [vmem:[%s3574_s5 + $0x20] sm:$0xff] (%p46_p4), %v261_v4  ;;  %264 = vst [vmem:[%s3574_s5 + $0x28] sm:$0xff] (%p46_p4), %v263_v5  ;;  %v265_v6 = vld [vmem:[%s3569_s4 + $0x60] sm:$0xff] (%p46_p4)  ;;  %v267_v7 = vld [vmem:[%s3569_s4 + $0x68] sm:$0xff] (%p46_p4) }
  0x1c   : > { %v269_v8 = vld [vmem:[%s3569_s4 + $0x80] sm:$0xff]  ;;  %266 = vst [vmem:[%s3574_s5 + $0x30] sm:$0xff] %v265_v6  ;;  %268 = vst [vmem:[%s3574_s5 + $0x38] sm:$0xff] %v267_v7  ;;  %v271_v9 = vld [vmem:[%s3569_s4 + $0x88] sm:$0xff] }
  0x1d   : > { %270 = vst [vmem:[%s3574_s5 + $0x40] sm:$0xff] %v269_v8  ;;  %v273_v10 = vld [vmem:[%s3569_s4 + $0xa0] sm:$0xff]  ;;  %v275_v11 = vld [vmem:[%s3569_s4 + $0xa8] sm:$0xff]  ;;  %272 = vst [vmem:[%s3574_s5 + $0x48] sm:$0xff] %v271_v9 }
  0x1e   : > { %274 = vst [vmem:[%s3574_s5 + $0x50] sm:$0xff] %v273_v10  ;;  %276 = vst [vmem:[%s3574_s5 + $0x58] sm:$0xff] %v275_v11  ;;  %v277_v12 = vld [vmem:[%s3569_s4 + $0xc0] sm:$0xff]  ;;  %v279_v13 = vld [vmem:[%s3569_s4 + $0xc8] sm:$0xff] }
  0x1f   : > { %v281_v14 = vld [vmem:[%s3569_s4 + $0xe0] sm:$0xff]  ;;  %278 = vst [vmem:[%s3574_s5 + $0x60] sm:$0xff] %v277_v12  ;;  %280 = vst [vmem:[%s3574_s5 + $0x68] sm:$0xff] %v279_v13  ;;  %v283_v15 = vld [vmem:[%s3569_s4 + $0xe8] sm:$0xff] }
  0x20   : > { %282 = vst [vmem:[%s3574_s5 + $0x70] sm:$0xff] %v281_v14  ;;  %v285_v16 = vld [vmem:[%s3569_s4 + $0x100] sm:$0xff]  ;;  %v287_v17 = vld [vmem:[%s3569_s4 + $0x108] sm:$0xff]  ;;  %284 = vst [vmem:[%s3574_s5 + $0x78] sm:$0xff] %v283_v15 }
  0x21   : > { %286 = vst [vmem:[%s3574_s5 + $0x80] sm:$0xff] %v285_v16  ;;  %288 = vst [vmem:[%s3574_s5 + $0x88] sm:$0xff] %v287_v17  ;;  %v289_v18 = vld [vmem:[%s3569_s4 + $0x120] sm:$0xff]  ;;  %v291_v19 = vld [vmem:[%s3569_s4 + $0x128] sm:$0xff] }
  0x22   : > { %v293_v20 = vld [vmem:[%s3569_s4 + $0x140] sm:$0xff]  ;;  %290 = vst [vmem:[%s3574_s5 + $0x90] sm:$0xff] %v289_v18  ;;  %292 = vst [vmem:[%s3574_s5 + $0x98] sm:$0xff] %v291_v19  ;;  %v295_v21 = vld [vmem:[%s3569_s4 + $0x148] sm:$0xff] }
  0x23   : > { %294 = vst [vmem:[%s3574_s5 + $0xa0] sm:$0xff] %v293_v20  ;;  %v297_v22 = vld [vmem:[%s3569_s4 + $0x160] sm:$0xff]  ;;  %v299_v23 = vld [vmem:[%s3569_s4 + $0x168] sm:$0xff]  ;;  %296 = vst [vmem:[%s3574_s5 + $0xa8] sm:$0xff] %v295_v21 }
  0x24   : > { %298 = vst [vmem:[%s3574_s5 + $0xb0] sm:$0xff] %v297_v22  ;;  %300 = vst [vmem:[%s3574_s5 + $0xb8] sm:$0xff] %v299_v23  ;;  %v301_v24 = vld [vmem:[%s3569_s4 + $0x180] sm:$0xff]  ;;  %v303_v25 = vld [vmem:[%s3569_s4 + $0x188] sm:$0xff] }
  0x25   : > { %v305_v26 = vld [vmem:[%s3569_s4 + $0x1a0] sm:$0xff]  ;;  %302 = vst [vmem:[%s3574_s5 + $0xc0] sm:$0xff] %v301_v24  ;;  %304 = vst [vmem:[%s3574_s5 + $0xc8] sm:$0xff] %v303_v25  ;;  %v307_v27 = vld [vmem:[%s3569_s4 + $0x1a8] sm:$0xff] }
  0x26   : > { %306 = vst [vmem:[%s3574_s5 + $0xd0] sm:$0xff] %v305_v26  ;;  %v309_v28 = vld [vmem:[%s3569_s4 + $0x1c0] sm:$0xff]  ;;  %v311_v29 = vld [vmem:[%s3569_s4 + $0x1c8] sm:$0xff]  ;;  %308 = vst [vmem:[%s3574_s5 + $0xd8] sm:$0xff] %v307_v27 }
  0x27   : > { %310 = vst [vmem:[%s3574_s5 + $0xe0] sm:$0xff] %v309_v28  ;;  %312 = vst [vmem:[%s3574_s5 + $0xe8] sm:$0xff] %v311_v29  ;;  %v313_v30 = vld [vmem:[%s3569_s4 + $0x1e0] sm:$0xff]  ;;  %v315_v31 = vld [vmem:[%s3569_s4 + $0x1e8] sm:$0xff] }
  0x28   : > { %314 = vst [vmem:[%s3574_s5 + $0xf0] sm:$0xff] %v313_v30  ;;  %316 = vst [vmem:[%s3574_s5 + $0xf8] sm:$0xff] %v315_v31 }
  0x29 PF: > { %p2765_p11 = scmp.ge.s32.totalorder %s3479_s17, 1  ;;  %p340_p12 = scmp.lt.s32.totalorder %s3479_s17, 3 }
  0x2b   : > { %p341_p13 = pnand %p2765_p11, %p340_p12 }
  0x2c   : > { %s2768_s6 = sshll.u32 (!%p341_p13), %s3471_s15, 4  ;;  %s3641_s7 = sand.u32 (!%p341_p13), 1, %s3463_s13   ;;  %vm551_vm0 = vcmask (!%p341_p13), 130048   ;;  %vm517_vm1 = vcmask (!%p341_p13), 1041409   ;;  %vm520_vm2 = vcmask (!%p341_p13), 1042434   ;;  %vm523_vm3 = vcmask (!%p341_p13), 1043459  }
  0x2d   : > { %344 = sbr.rel (%p341_p13) target bundleno = 536 (0x218), region = 66  ;;  %p384_p0 = scmp.lt.s32.totalorder (!%p341_p13), %s2768_s6, 31  ;;  %vm526_vm4 = vcmask (!%p341_p13), 1044484   ;;  %vm529_vm5 = vcmask (!%p341_p13), 1045509   ;;  %vm532_vm6 = vcmask (!%p341_p13), 1046534   ;;  %vm535_vm7 = vcmask (!%p341_p13), 1047559   ;;  %vm3683_vm8 = vmpackc.low (!%p341_p13), %vm551_vm0, %vm551_vm0 }
  0x2e   : > { %s2766_s8 = sshll.u32 (!%p341_p13), %s3641_s7, 8  ;;  %s2771_s21 = sshll.u32 (!%p341_p13), %s3471_s15, 1  ;;  %vm2600_vm9 = vcmask (!%p341_p13), 261120   ;;  %vm2603_vm10 = vcmask (!%p341_p13), 523264   ;;  %vm2606_vm11 = vcmask (!%p341_p13), 785408  }
  0x2f   : > { %s3644_s9 = scalar_lea.vmem (!%p341_p13), [#allocation2], %s2766_s8  ;;  %p4451_p1 = scmp.lt.s32.totalorder (!%p341_p13), %s2771_s21, 3 }
  0x30   : > { %v3647_v32 = vld [vmem:[%s3644_s9] sm:$0xff] (!%p341_p13)  ;;  %v3650_v33 = vld [vmem:[%s3644_s9 + $0x10] sm:$0xff] (!%p341_p13)  ;;  %s3481_s30 = smov (!%p341_p13), 32   ;;  %s3482_s4 = smov (!%p341_p13), 64  }
  0x31   : > { %v3653_v34 = vld [vmem:[%s3644_s9 + $0x20] sm:$0xff] (!%p341_p13)  ;;  %v3656_v35 = vld [vmem:[%s3644_s9 + $0x30] sm:$0xff] (!%p341_p13)  ;;  %v516_v38 = vrot.slane (!%p341_p13), %v3650_v33, 7  ;;  %v647_v40 = vrot.slane (!%p341_p13), %v3647_v32, 1  ;;  %s3483_s5 = smov (!%p341_p13), 96   ;;  %s3484_s23 = smov (!%p341_p13), [#allocation3]  }
  0x32   : > { %v3659_v36 = vld [vmem:[%s3644_s9 + $0x40] sm:$0xff] (!%p341_p13)  ;;  %v3662_v37 = vld [vmem:[%s3644_s9 + $0x50] sm:$0xff] (!%p341_p13)  ;;  %v519_v39 = vrot.slane (!%p341_p13), %v3653_v34, 6  ;;  %v522_v43 = vrot.slane (!%p341_p13), %v3656_v35, 5  ;;  %v649_v57 = vrot.slane (!%p341_p13), %v3653_v34, 7  ;;  %v651_v58 = vrot.slane (!%p341_p13), %v3656_v35, 6 }
  0x33   : > { %v3668_v41 = vld [vmem:[%s3644_s9 + $0x60] sm:$0xff] (!%p341_p13)  ;;  %v3671_v42 = vld [vmem:[%s3644_s9 + $0x70] sm:$0xff] (!%p341_p13)  ;;  %v525_v44 = vrot.slane (!%p341_p13), %v3659_v36, 4  ;;  %v528_v45 = vrot.slane (!%p341_p13), %v3662_v37, 3  ;;  %v518_v47 = vsel (!%p341_p13), %vm517_vm1, %v516_v38, %v3647_v32  ;;  %v648_v50 = vsel (!%p341_p13), %vm517_vm1, %v3650_v33, %v647_v40 }
  0x34   : > { %s4761_s6 = smov (!%p384_p0, %s2768_s6), 31  ;;  %v531_v48 = vrot.slane %v3668_v41, 2  ;;  %v534_v49 = vrot.slane %v3671_v42, 1  ;;  %v3694_v51 = vld [vmem:[%s3644_s9 + $0x90] sm:$0xff]  ;;  %v3697_v52 = vld [vmem:[%s3644_s9 + $0xa0] sm:$0xff]  ;;  %v521_v56 = vsel %vm520_vm2, %v519_v39, %v518_v47  ;;  %v653_v59 = vrot.slane %v3659_v36, 5 }
  0x35   : > { %s2875_s10 = sshll.u32 %s4761_s6, 5  ;;  %v524_v0 = vsel %vm523_vm3, %v522_v43, %v521_v56  ;;  %v655_v1 = vrot.slane %v3662_v37, 4  ;;  %v657_v2 = vrot.slane %v3668_v41, 3  ;;  %v650_v8 = vsel %vm520_vm2, %v649_v57, %v648_v50  ;;  %v3719_v9 = vld [vmem:[%s3644_s9 + $0xb0] sm:$0xff]  ;;  %v3727_v14 = vld [vmem:[%s3644_s9 + $0xc0] sm:$0xff]  ;;  %s4763_s21 = smov (!%p4451_p1, %s2771_s21), 3 }
  0x36   : > { %s3679_s19 = scalar_lea.vmem %s4745_s1, %s2875_s10  ;;  %v527_v7 = vsel %vm526_vm4, %v525_v44, %v524_v0  ;;  %v652_v12 = vsel %vm523_vm3, %v651_v58, %v650_v8  ;;  %v659_v13 = vrot.slane %v3671_v42, 2  ;;  %v3730_v15 = vld [vmem:[%s3644_s9 + $0xd0] sm:$0xff]  ;;  %v3733_v16 = vld [vmem:[%s3644_s9 + $0xe0] sm:$0xff]  ;;  %v537_v21 = vrot.slane %v3694_v51, 7  ;;  %s2772_s26 = sshll.u32 %s4763_s21, 3 }
  0x37   : > { %v430_v53 = vld [vmem:[%s3679_s19] sm:$0xff]  ;;  %v431_v54 = vld [vmem:[%s3679_s19 + $0x8] sm:$0xff]  ;;  %v432_v62 = vld [vmem:[%s3679_s19 + $0x10] sm:$0xff]  ;;  %v530_v11 = vsel %vm529_vm5, %v528_v45, %v527_v7  ;;  %v654_v18 = vsel %vm526_vm4, %v653_v59, %v652_v12  ;;  %v539_v22 = vrot.slane %v3697_v52, 6  ;;  %v541_v25 = vrot.slane %v3719_v9, 5  ;;  %s394_s29 = scalar_lea.vmem %s4746_s2, %s2772_s26  ;;  %s2767_s6 = sshll.u32 %s3641_s7, 6 }
  0x38   : > { %v434_v55 = vld [vmem:[%s3679_s19 + $0x20] sm:$0xff]  ;;  %v3149_v60 = vpack.c.bf16 %v431_v54, %v430_v53  ;;  %v435_v61 = vld [vmem:[%s3679_s19 + $0x28] sm:$0xff]  ;;  %v433_v63 = vld [vmem:[%s3679_s19 + $0x18] sm:$0xff]  ;;  %v533_v17 = vsel %vm532_vm6, %v531_v48, %v530_v11  ;;  %v656_v24 = vsel %vm529_vm5, %v655_v1, %v654_v18  ;;  %v543_v26 = vrot.slane %v3727_v14, 4  ;;  %s4652_s8 = scalar_lea.vmem [#allocation3], %s2767_s6  ;;  %s2876_s10 = sshll.u32 %s3471_s15, 9 }
  0x39   : > { %v3161_v3 = vpack.c.bf16 %v435_v61, %v434_v55  ;;  %v3712_v4 = vpack.c.bf16 %v433_v63, %v432_v62  ;;  %v436_v5 = vld [vmem:[%s3679_s19 + $0x30] sm:$0xff]  ;;  %v437_v6 = vld [vmem:[%s3679_s19 + $0x38] sm:$0xff]  ;;  %v3742_v19 = vld [vmem:[%s3644_s9 + $0x80] sm:$0xff]  ;;  %v536_v23 = vsel %vm535_vm7, %v534_v49, %v533_v17  ;;  %v658_v27 = vsel %vm532_vm6, %v657_v2, %v656_v24  ;;  %s2636_s15 = scalar_lea.sflag [#allocation4], %s3641_s7  ;;  %s3405_s26 = sshll.u32 %s3484_s23, 4  ;;  %s3406_s26 = int_to_ptr.vmem [resolvable:$false] %s3405_s26 }
  0x3a   : > { %3151 = vmatprep.subr.msk.bf16.mxu0 %vm3683_vm8, %v3149_v60  ;;  %v3167_v10 = vpack.c.bf16 %v437_v6, %v436_v5  ;;  %v3745_v20 = vld [vmem:[%s3644_s9 + $0xf0] sm:$0xff]  ;;  %2981 = vmatprep.mubr.msk.f32.mxu0 %vm551_vm0, %v536_v23  ;;  %v538_v28 = vsel %vm517_vm1, %v537_v21, %v3742_v19  ;;  %v545_v29 = vrot.slane %v3730_v15, 3  ;;  %v547_v30 = vrot.slane %v3733_v16, 2  ;;  %v438_v43 = vld [vmem:[%s3679_s19 + $0x40] sm:$0xff]  ;;  %v439_v44 = vld [vmem:[%s3679_s19 + $0x48] sm:$0xff]  ;;  %s3407_s27 = scalar_lea.vmem %s3406_s26, 2048 }
  0x3b   : > { %3163 = vmatprep.subr.msk.bf16.mxu1 %vm3683_vm8, %v3161_v3  ;;  %3154 = vmatpush3.bf16.xpose.msk.msra.mxu0 %vm3683_vm8, %v3149_v60  ;;  %v660_v31 = vsel %vm535_vm7, %v659_v13, %v658_v27  ;;  %v540_v38 = vsel %vm520_vm2, %v539_v22, %v538_v28  ;;  %v549_v39 = vrot.slane %v3745_v20, 1  ;;  %v661_v40 = vrot.slane %v3742_v19, 1  ;;  %v442_v45 = vld [vmem:[%s3679_s19 + $0x60] sm:$0xff]  ;;  %v443_v53 = vld [vmem:[%s3679_s19 + $0x68] sm:$0xff]  ;;  %v440_v54 = vld [vmem:[%s3679_s19 + $0x50] sm:$0xff] }
  0x3c   : > { %3166 = vmatpush3.bf16.xpose.msk.msra.mxu1 %vm3683_vm8, %v3161_v3  ;;  %3157 = vmatprep.subr.msk.bf16.mxu0 %vm3683_vm8, %v3712_v4  ;;  %v542_v47 = vsel %vm523_vm3, %v541_v25, %v540_v38  ;;  %v663_v48 = vrot.slane %v3697_v52, 7  ;;  %v665_v49 = vrot.slane %v3719_v9, 6  ;;  %v667_v50 = vrot.slane %v3727_v14, 5  ;;  %v441_v55 = vld [vmem:[%s3679_s19 + $0x58] sm:$0xff]  ;;  %v444_v60 = vld [vmem:[%s3679_s19 + $0x70] sm:$0xff]  ;;  %v495_v46 = vld [vmem:[%s394_s29 + $0x8] sm:$0xff] }
  0x3d   : > { %3169 = vmatprep.subr.msk.bf16.mxu1 %vm3683_vm8, %v3167_v10  ;;  %2992 = vmatprep.mubr.msk.f32.mxu1 %vm551_vm0, %v660_v31  ;;  %v544_v56 = vsel %vm526_vm4, %v543_v26, %v542_v47  ;;  %v662_v57 = vsel %vm517_vm1, %v3694_v51, %v661_v40  ;;  %v669_v58 = vrot.slane %v3730_v15, 4  ;;  %v671_v59 = vrot.slane %v3733_v16, 3  ;;  %v445_v61 = vld [vmem:[%s3679_s19 + $0x78] sm:$0xff] }
  0x3e   : > { %v546_v62 = vsel %vm529_vm5, %v545_v29, %v544_v56  ;;  %v664_v63 = vsel %vm520_vm2, %v663_v48, %v662_v57  ;;  %v673_v0 = vrot.slane %v3745_v20, 2  ;;  %v3173_v1 = vpack.c.bf16 %v439_v44, %v438_v43  ;;  %v447_v56 = vld [vmem:[%s3679_s19 + $0x88] sm:$0xff] }
  0x3f   : > { %v548_v2 = vsel %vm532_vm6, %v547_v30, %v546_v62  ;;  %v666_v3 = vsel %vm523_vm3, %v665_v49, %v664_v63  ;;  %v3185_v5 = vpack.c.bf16 %v443_v53, %v442_v45  ;;  %v3793_v6 = vpack.c.bf16 %v441_v55, %v440_v54  ;;  %v446_v55 = vld [vmem:[%s3679_s19 + $0x80] sm:$0xff]  ;;  %v451_v62 = vld [vmem:[%s3679_s19 + $0xa8] sm:$0xff] }
  0x40   : > { %v550_v7 = vsel %vm535_vm7, %v549_v39, %v548_v2  ;;  %v668_v8 = vsel %vm526_vm4, %v667_v50, %v666_v3  ;;  %v3800_v11 = vpack.c.bf16 %v445_v61, %v444_v60  ;;  %v770_v12 = vrot.slane %v3647_v32, 2  ;;  %v450_v61 = vld [vmem:[%s3679_s19 + $0xa0] sm:$0xff] }
  0x41   : > { %v670_v13 = vsel %vm529_vm5, %v669_v58, %v668_v8  ;;  %v771_v17 = vrot.slane %v3650_v33, 1  ;;  %v776_v18 = vrot.slane %v3659_v36, 6  ;;  %v778_v22 = vrot.slane %v3662_v37, 5 }
  0x42   : > { %v672_v21 = vsel %vm532_vm6, %v671_v59, %v670_v13  ;;  %v782_v23 = vrot.slane %v3671_v42, 3  ;;  %v784_v26 = vrot.slane %v3742_v19, 2  ;;  %v785_v27 = vrot.slane %v3694_v51, 1 }
  0x43   : > { %3160 = vmatpush3.bf16.xpose.msk.msra.mxu0 %vm3683_vm8, %v3712_v4  ;;  %v774_v4 = vrot.slane %v3656_v35, 7  ;;  %v674_v24 = vsel %vm535_vm7, %v673_v0, %v672_v21  ;;  %v772_v25 = vsel %vm517_vm1, %v771_v17, %v770_v12  ;;  %v788_v29 = vrot.slane %v3719_v9, 7  ;;  %v448_v12 = vld [vmem:[%s3679_s19 + $0x90] sm:$0xff]  ;;  %v449_v21 = vld [vmem:[%s3679_s19 + $0x98] sm:$0xff] }
  0x44   : > { %3172 = vmatpush3.bf16.xpose.msk.msra.mxu1 %vm3683_vm8, %v3167_v10  ;;  %3175 = vmatprep.subr.msk.bf16.mxu0 %vm3683_vm8, %v3173_v1  ;;  %v780_v10 = vrot.slane %v3668_v41, 4  ;;  %v773_v28 = vsel %vm520_vm2, %v3653_v34, %v772_v25  ;;  %v790_v30 = vrot.slane %v3727_v14, 6  ;;  %v792_v31 = vrot.slane %v3730_v15, 5 }
  0x45   : > { %3187 = vmatprep.subr.msk.bf16.mxu1 %vm3683_vm8, %v3185_v5  ;;  %v775_v38 = vsel %vm523_vm3, %v774_v4, %v773_v28  ;;  %v786_v39 = vsel %vm517_vm1, %v785_v27, %v784_v26  ;;  %v794_v40 = vrot.slane %v3733_v16, 4  ;;  %v796_v43 = vrot.slane %v3745_v20, 3 }
  0x46   : > { %v777_v44 = vsel %vm526_vm4, %v776_v18, %v775_v38  ;;  %v787_v45 = vsel %vm520_vm2, %v3697_v52, %v786_v39  ;;  %v893_v47 = vrot.slane %v3647_v32, 3  ;;  %v894_v48 = vrot.slane %v3650_v33, 2 }
  0x47   : > { %v779_v49 = vsel %vm529_vm5, %v778_v22, %v777_v44  ;;  %v789_v50 = vsel %vm523_vm3, %v788_v29, %v787_v45  ;;  %v896_v53 = vrot.slane %v3653_v34, 1  ;;  %v899_v54 = vrot.slane %v3659_v36, 7  ;;  %v452_v22 = vld [vmem:[%s3679_s19 + $0xb0] sm:$0xff] }
  0x48   : > { %v781_v57 = vsel %vm532_vm6, %v780_v10, %v779_v49  ;;  %v791_v58 = vsel %vm526_vm4, %v790_v30, %v789_v50  ;;  %v895_v59 = vsel %vm517_vm1, %v894_v48, %v893_v47  ;;  %v901_v60 = vrot.slane %v3662_v37, 6  ;;  %v453_v10 = vld [vmem:[%s3679_s19 + $0xb8] sm:$0xff] }
  0x49   : > { %v783_v63 = vsel %vm535_vm7, %v782_v23, %v781_v57  ;;  %v793_v0 = vsel %vm529_vm5, %v792_v31, %v791_v58  ;;  %v903_v2 = vrot.slane %v3668_v41, 5  ;;  %v3868_v8 = vpack.c.bf16 %v447_v56, %v446_v55 }
  0x4a   : > { %2982 = vmatmul.mubr.msk.f32.vlgmr.msra.gmra.mrb[0].mxu0 %vm551_vm0, %v550_v7  ;;  %v795_v3 = vsel %vm532_vm6, %v794_v40, %v793_v0  ;;  %v905_v7 = vrot.slane %v3671_v42, 4  ;;  %v3873_v4 = vpack.c.bf16 %v451_v62, %v450_v61  ;;  %v907_v18 = vrot.slane %v3742_v19, 3 }
  0x4b   : > { %2993 = vmatmul.mubr.msk.f32.vlgmr.msra.gmra.mrb[0].mxu1 %vm551_vm0, %v674_v24  ;;  %3178 = vmatpush3.bf16.xpose.msk.msra.mxu0 %vm3683_vm8, %v3173_v1  ;;  %v897_v1 = vsel %vm520_vm2, %v896_v53, %v895_v59  ;;  %v797_v13 = vsel %vm535_vm7, %v796_v43, %v795_v3  ;;  %v908_v24 = vrot.slane %v3694_v51, 2  ;;  %v910_v25 = vrot.slane %v3697_v52, 1 }
  0x4c   : > { %3190 = vmatpush3.bf16.xpose.msk.msra.mxu1 %vm3683_vm8, %v3185_v5  ;;  %3181 = vmatprep.subr.msk.bf16.mxu0 %vm3683_vm8, %v3793_v6  ;;  %v898_v5 = vsel %vm523_vm3, %v3656_v35, %v897_v1  ;;  %v913_v26 = vrot.slane %v3727_v14, 7  ;;  %v915_v28 = vrot.slane %v3730_v15, 6  ;;  %v917_v29 = vrot.slane %v3733_v16, 5 }
  0x4d   : > { %3193 = vmatprep.subr.msk.bf16.mxu1 %vm3683_vm8, %v3800_v11  ;;  %3003 = vmatprep.mubr.msk.f32.mxu0 %vm551_vm0, %v783_v63  ;;  %v900_v17 = vsel %vm526_vm4, %v899_v54, %v898_v5  ;;  %v919_v30 = vrot.slane %v3745_v20, 4  ;;  %v909_v38 = vsel %vm517_vm1, %v908_v24, %v907_v18  ;;  %v3889_v39 = vpack.c.bf16 %v449_v21, %v448_v12 }
  0x4e   : > { %v902_v23 = vsel %vm529_vm5, %v901_v60, %v900_v17  ;;  %v3891_v40 = vpack.c.bf16 %v453_v10, %v452_v22  ;;  %v911_v43 = vsel %vm520_vm2, %v910_v25, %v909_v38  ;;  %v1016_v44 = vrot.slane %v3647_v32, 4 }
  0x4f   : > { %v904_v27 = vsel %vm532_vm6, %v903_v2, %v902_v23  ;;  %v1017_v45 = vrot.slane %v3650_v33, 3  ;;  %v1019_v47 = vrot.slane %v3653_v34, 2  ;;  %v912_v48 = vsel %vm523_vm3, %v3719_v9, %v911_v43  ;;  %v454_v43 = vld [vmem:[%s3679_s19 + $0xc0] sm:$0xff] }
  0x50   : > { %v906_v31 = vsel %vm535_vm7, %v905_v7, %v904_v27  ;;  %v1021_v49 = vrot.slane %v3656_v35, 1  ;;  %v1024_v50 = vrot.slane %v3662_v37, 7  ;;  %v1026_v53 = vrot.slane %v3668_v41, 6 }
  0x51   : > { %3014 = vmatprep.mubr.msk.f32.mxu1 %vm551_vm0, %v906_v31  ;;  %v914_v54 = vsel %vm526_vm4, %v913_v26, %v912_v48  ;;  %v1028_v55 = vrot.slane %v3671_v42, 5  ;;  %v1139_v56 = vrot.slane %v3647_v32, 5  ;;  %v1140_v58 = vrot.slane %v3650_v33, 4 }
  0x52   : > { %v916_v57 = vsel %vm529_vm5, %v915_v28, %v914_v54  ;;  %v1142_v59 = vrot.slane %v3653_v34, 3  ;;  %v1144_v62 = vrot.slane %v3656_v35, 2  ;;  %v1146_v63 = vrot.slane %v3659_v36, 1  ;;  %v457_v54 = vld [vmem:[%s3679_s19 + $0xd8] sm:$0xff] }
  0x53   : > { %3184 = vmatpush3.bf16.xpose.msk.msra.mxu0 %vm3683_vm8, %v3793_v6  ;;  %v1018_v6 = vsel %vm517_vm1, %v1017_v45, %v1016_v44  ;;  %v918_v60 = vsel %vm532_vm6, %v917_v29, %v916_v57  ;;  %v1141_v2 = vsel %vm517_vm1, %v1140_v58, %v1139_v56  ;;  %v1149_v3 = vrot.slane %v3668_v41, 7  ;;  %v455_v44 = vld [vmem:[%s3679_s19 + $0xc8] sm:$0xff]  ;;  %v458_v45 = vld [vmem:[%s3679_s19 + $0xe0] sm:$0xff]  ;;  %v461_v58 = vld [vmem:[%s3679_s19 + $0xf8] sm:$0xff] }
  0x54   : > { %3196 = vmatpush3.bf16.xpose.msk.msra.mxu1 %vm3683_vm8, %v3800_v11  ;;  %3199 = vmatprep.subr.msk.bf16.mxu0 %vm3683_vm8, %v3868_v8  ;;  %v1020_v11 = vsel %vm520_vm2, %v1019_v47, %v1018_v6  ;;  %v920_v0 = vsel %vm535_vm7, %v919_v30, %v918_v60  ;;  %v1143_v7 = vsel %vm520_vm2, %v1142_v59, %v1141_v2  ;;  %v1151_v12 = vrot.slane %v3671_v42, 6 }
  0x55   : > { %3211 = vmatprep.subr.msk.bf16.mxu1 %vm3683_vm8, %v3873_v4  ;;  %v1022_v61 = vsel %vm523_vm3, %v1021_v49, %v1020_v11  ;;  %v1030_v17 = vrot.slane %v3742_v19, 4  ;;  %v1145_v21 = vsel %vm523_vm3, %v1144_v62, %v1143_v7  ;;  %v1031_v22 = vrot.slane %v3694_v51, 3  ;;  %v460_v11 = vld [vmem:[%s3679_s19 + $0xf0] sm:$0xff] }
  0x56   : > { %v1023_v1 = vsel %vm526_vm4, %v3659_v36, %v1022_v61  ;;  %v1033_v10 = vrot.slane %v3697_v52, 2  ;;  %v1147_v24 = vsel %vm526_vm4, %v1146_v63, %v1145_v21  ;;  %v1035_v25 = vrot.slane %v3719_v9, 1 }
  0x57   : > { %v1025_v5 = vsel %vm529_vm5, %v1024_v50, %v1023_v1  ;;  %v1038_v26 = vrot.slane %v3730_v15, 7  ;;  %v1032_v27 = vsel %vm517_vm1, %v1031_v22, %v1030_v17  ;;  %v1040_v28 = vrot.slane %v3733_v16, 6  ;;  %v459_v50 = vld [vmem:[%s3679_s19 + $0xe8] sm:$0xff] }
  0x58   : > { %v1027_v18 = vsel %vm532_vm6, %v1026_v53, %v1025_v5  ;;  %v1042_v29 = vrot.slane %v3745_v20, 5  ;;  %v1034_v30 = vsel %vm520_vm2, %v1033_v10, %v1032_v27  ;;  %v1153_v31 = vrot.slane %v3742_v19, 5  ;;  %v456_v53 = vld [vmem:[%s3679_s19 + $0xd0] sm:$0xff] }
  0x59   : > { %v1029_v23 = vsel %vm535_vm7, %v1028_v55, %v1027_v18  ;;  %v1154_v38 = vrot.slane %v3694_v51, 4  ;;  %v1036_v47 = vsel %vm523_vm3, %v1035_v25, %v1034_v30  ;;  %v1156_v48 = vrot.slane %v3697_v52, 3 }
  0x5a   : > { %3004 = vmatmul.mubr.msk.f32.vlgmr.msra.gmra.mrb[2].mxu0 %vm551_vm0, %v797_v13  ;;  %v1148_v13 = vsel %vm529_vm5, %v3662_v37, %v1147_v24  ;;  %v1158_v49 = vrot.slane %v3719_v9, 2  ;;  %v1037_v6 = vsel %vm526_vm4, %v3727_v14, %v1036_v47  ;;  %v1160_v56 = vrot.slane %v3727_v14, 1 }
  0x5b   : > { %3015 = vmatmul.mubr.msk.f32.vlgmr.msra.gmra.mrb[2].mxu1 %vm551_vm0, %v920_v0  ;;  %3202 = vmatpush3.bf16.xpose.msk.msra.mxu0 %vm3683_vm8, %v3868_v8  ;;  %v1150_v8 = vsel %vm532_vm6, %v1149_v3, %v1148_v13  ;;  %v1155_v55 = vsel %vm517_vm1, %v1154_v38, %v1153_v31  ;;  %v1163_v57 = vrot.slane %v3733_v16, 7  ;;  %v1039_v59 = vsel %vm529_vm5, %v1038_v26, %v1037_v6 }
  0x5c   : > { %3214 = vmatpush3.bf16.xpose.msk.msra.mxu1 %vm3683_vm8, %v3873_v4  ;;  %3205 = vmatprep.subr.msk.bf16.mxu0 %vm3683_vm8, %v3889_v39  ;;  %v1152_v4 = vsel %vm535_vm7, %v1151_v12, %v1150_v8  ;;  %v1157_v60 = vsel %vm520_vm2, %v1156_v48, %v1155_v55  ;;  %v1165_v61 = vrot.slane %v3745_v20, 6  ;;  %v3221_v62 = vpack.c.bf16 %v455_v44, %v454_v43 }
  0x5d   : > { %3217 = vmatprep.subr.msk.bf16.mxu1 %vm3683_vm8, %v3891_v40  ;;  %3025 = vmatprep.mubr.msk.f32.mxu0 %vm551_vm0, %v1029_v23  ;;  %v1041_v63 = vsel %vm532_vm6, %v1040_v28, %v1039_v59  ;;  %v1159_v0 = vsel %vm523_vm3, %v1158_v49, %v1157_v60  ;;  %v3233_v1 = vpack.c.bf16 %v459_v50, %v458_v45  ;;  %v1262_v12 = vrot.slane %v3647_v32, 6  ;;  %v466_v60 = vld [vmem:[%s3679_s19 + $0x120] sm:$0xff] }
  0x5e   : > { %3036 = vmatprep.mubr.msk.f32.mxu1 %vm551_vm0, %v1152_v4  ;;  %v3991_v2 = vpack.c.bf16 %v457_v54, %v456_v53  ;;  %v1043_v3 = vsel %vm535_vm7, %v1042_v29, %v1041_v63  ;;  %v1161_v5 = vsel %vm526_vm4, %v1160_v56, %v1159_v0  ;;  %v3995_v7 = vpack.c.bf16 %v461_v58, %v460_v11  ;;  %v463_v56 = vld [vmem:[%s3679_s19 + $0x108] sm:$0xff]  ;;  %v464_v0 = vld [vmem:[%s3679_s19 + $0x110] sm:$0xff] }
  0x5f   : > { %v1162_v17 = vsel %vm529_vm5, %v3730_v15, %v1161_v5  ;;  %v1263_v18 = vrot.slane %v3650_v33, 5  ;;  %v1265_v21 = vrot.slane %v3653_v34, 4  ;;  %v1267_v22 = vrot.slane %v3656_v35, 3 }
  0x60   : > { %v1164_v10 = vsel %vm532_vm6, %v1163_v57, %v1162_v17  ;;  %v1269_v23 = vrot.slane %v3659_v36, 2  ;;  %v1271_v24 = vrot.slane %v3662_v37, 1  ;;  %v1274_v25 = vrot.slane %v3671_v42, 7 }
  0x61   : > { %v1166_v26 = vsel %vm535_vm7, %v1165_v61, %v1164_v10  ;;  %v1264_v13 = vsel %vm517_vm1, %v1263_v18, %v1262_v12  ;;  %v1277_v27 = vrot.slane %v3694_v51, 5  ;;  %v1279_v29 = vrot.slane %v3697_v52, 4  ;;  %v467_v61 = vld [vmem:[%s3679_s19 + $0x128] sm:$0xff]  ;;  %v4082_v18 = vld [vmem:[%s3644_s9 + $0x18] sm:$0xff] }
  0x62   : > { %v1266_v28 = vsel %vm520_vm2, %v1265_v21, %v1264_v13  ;;  %v1283_v8 = vrot.slane %v3727_v14, 2  ;;  %v1285_v38 = vrot.slane %v3730_v15, 1  ;;  %v1288_v43 = vrot.slane %v3745_v20, 7  ;;  %v4085_v21 = vld [vmem:[%s3644_s9 + $0x28] sm:$0xff] }
  0x63   : > { %3208 = vmatpush3.bf16.xpose.msk.msra.mxu0 %vm3683_vm8, %v3889_v39  ;;  %v1276_v39 = vrot.slane %v3742_v19, 6  ;;  %v1268_v30 = vsel %vm523_vm3, %v1267_v22, %v1266_v28  ;;  %v1385_v4 = vrot.slane %v3647_v32, 7  ;;  %v1386_v47 = vrot.slane %v3650_v33, 6  ;;  %v462_v33 = vld [vmem:[%s3679_s19 + $0x100] sm:$0xff]  ;;  %v4088_v22 = vld [vmem:[%s3644_s9 + $0x38] sm:$0xff]  ;;  %v4109_v28 = vld [vmem:[%s3644_s9 + $0x8] sm:$0xff] }
  0x64   : > { %3220 = vmatpush3.bf16.xpose.msk.msra.mxu1 %vm3683_vm8, %v3891_v40  ;;  %3223 = vmatprep.subr.msk.bf16.mxu0 %vm3683_vm8, %v3221_v62  ;;  %v1281_v40 = vrot.slane %v3719_v9, 3  ;;  %v1270_v44 = vsel %vm526_vm4, %v1269_v23, %v1268_v30  ;;  %v1388_v50 = vrot.slane %v3653_v34, 5  ;;  %v1390_v53 = vrot.slane %v3656_v35, 4 }
  0x65   : > { %3235 = vmatprep.subr.msk.bf16.mxu1 %vm3683_vm8, %v3233_v1  ;;  %v1278_v31 = vsel %vm517_vm1, %v1277_v27, %v1276_v39  ;;  %v1272_v48 = vsel %vm529_vm5, %v1271_v24, %v1270_v44  ;;  %v1387_v55 = vsel %vm517_vm1, %v1386_v47, %v1385_v4  ;;  %v1392_v32 = vrot.slane %v3659_v36, 3 }
  0x66   : > { %v1280_v45 = vsel %vm520_vm2, %v1279_v29, %v1278_v31  ;;  %v1273_v54 = vsel %vm532_vm6, %v3668_v41, %v1272_v48  ;;  %v1389_v35 = vsel %vm520_vm2, %v1388_v50, %v1387_v55  ;;  %v1394_v11 = vrot.slane %v3662_v37, 2  ;;  %v4151_v55 = vld [vmem:[%s3644_s9 + $0x98] sm:$0xff] }
  0x67   : > { %v1282_v49 = vsel %vm523_vm3, %v1281_v40, %v1280_v45  ;;  %v1275_v57 = vsel %vm535_vm7, %v1274_v25, %v1273_v54  ;;  %v1391_v58 = vsel %vm523_vm3, %v1390_v53, %v1389_v35  ;;  %v1396_v59 = vrot.slane %v3668_v41, 1  ;;  %v469_v25 = vld [vmem:[%s3679_s19 + $0x138] sm:$0xff]  ;;  %v4167_v35 = vld [vmem:[%s3644_s9 + $0xc8] sm:$0xff] }
  0x68   : > { %v1284_v6 = vsel %vm526_vm4, %v1283_v8, %v1282_v49  ;;  %v4067_v63 = vpack.c.bf16 %v463_v56, %v462_v33  ;;  %v1399_v41 = vrot.slane %v3742_v19, 7  ;;  %v1400_v12 = vrot.slane %v3694_v51, 6 }
  0x69   : > { %v1286_v34 = vsel %vm529_vm5, %v1285_v38, %v1284_v6  ;;  %v1402_v17 = vrot.slane %v3697_v52, 5  ;;  %v1404_v19 = vrot.slane %v3719_v9, 4  ;;  %v4091_v23 = vpack.c.bf16 %v467_v61, %v466_v60  ;;  %v4097_v52 = vld [vmem:[%s3644_s9 + $0x48] sm:$0xff]  ;;  %v4100_v9 = vld [vmem:[%s3644_s9 + $0x58] sm:$0xff] }
  0x6a   : > { %3026 = vmatmul.mubr.msk.f32.vlgmr.msra.gmra.mrb[4].mxu0 %vm551_vm0, %v1043_v3  ;;  %v1287_v36 = vsel %vm532_vm6, %v3733_v16, %v1286_v34  ;;  %v465_v3 = vld [vmem:[%s3679_s19 + $0x118] sm:$0xff]  ;;  %v1406_v24 = vrot.slane %v3727_v14, 3  ;;  %v1408_v51 = vrot.slane %v3730_v15, 2  ;;  %v1401_v13 = vsel %vm517_vm1, %v1400_v12, %v1399_v41  ;;  %v4112_v14 = vld [vmem:[%s3644_s9 + $0x68] sm:$0xff] }
  0x6b   : > { %3037 = vmatmul.mubr.msk.f32.vlgmr.msra.gmra.mrb[4].mxu1 %vm551_vm0, %v1166_v26  ;;  %3226 = vmatpush3.bf16.xpose.msk.msra.mxu0 %vm3683_vm8, %v3221_v62  ;;  %v4064_v37 = vsel %vm535_vm7, %v1288_v43, %v1287_v36  ;;  %v1393_v62 = vsel %vm526_vm4, %v1392_v32, %v1391_v58  ;;  %v1410_v39 = vrot.slane %v3733_v16, 1  ;;  %v4106_v27 = vpack.c.bf16 %v465_v3, %v464_v0  ;;  %v4123_v16 = vld [vmem:[%s3644_s9 + $0x78] sm:$0xff]  ;;  %v4154_v32 = vld [vmem:[%s3644_s9 + $0xa8] sm:$0xff] }
  0x6c   : > { %3238 = vmatpush3.bf16.xpose.msk.msra.mxu1 %vm3683_vm8, %v3233_v1  ;;  %3229 = vmatprep.subr.msk.bf16.mxu0 %vm3683_vm8, %v3991_v2  ;;  %v468_v1 = vld [vmem:[%s3679_s19 + $0x130] sm:$0xff]  ;;  %v1395_v5 = vsel %vm529_vm5, %v1394_v11, %v1393_v62  ;;  %v1403_v15 = vsel %vm520_vm2, %v1402_v17, %v1401_v13  ;;  %v1524_v29 = vrot.slane %v4082_v18, 7  ;;  %v1526_v40 = vrot.slane %v4085_v21, 6  ;;  %v4164_v34 = vld [vmem:[%s3644_s9 + $0xb8] sm:$0xff]  ;;  %v4179_v41 = vld [vmem:[%s3644_s9 + $0x88] sm:$0xff] }
  0x6d   : > { %3241 = vmatprep.subr.msk.bf16.mxu1 %vm3683_vm8, %v3995_v7  ;;  %3047 = vmatprep.mubr.msk.f32.mxu0 %vm551_vm0, %v1275_v57  ;;  %v1397_v10 = vsel %vm532_vm6, %v1396_v59, %v1395_v5  ;;  %v1405_v8 = vsel %vm523_vm3, %v1404_v19, %v1403_v15  ;;  %v4120_v30 = vpack.c.bf16 %v469_v25, %v468_v1  ;;  %v1530_v31 = vrot.slane %v4097_v52, 4  ;;  %v4174_v60 = vld [vmem:[%s3644_s9 + $0xd8] sm:$0xff]  ;;  %v4182_v0 = vld [vmem:[%s3644_s9 + $0xe8] sm:$0xff] }
  0x6e   : > { %v1398_v26 = vsel %vm535_vm7, %v3671_v42, %v1397_v10  ;;  %v1528_v42 = vrot.slane %v4088_v22, 5  ;;  %v1532_v38 = vrot.slane %v4100_v9, 3  ;;  %v1407_v43 = vsel %vm526_vm4, %v1406_v24, %v1405_v8  ;;  %v470_v8 = vld [vmem:[%s3679_s19 + $0x140] sm:$0xff] }
  0x6f   : > { %3058 = vmatprep.mubr.msk.f32.mxu1 %vm551_vm0, %v1398_v26  ;;  %v1525_v44 = vsel %vm517_vm1, %v1524_v29, %v4109_v28  ;;  %v1534_v45 = vrot.slane %v4112_v14, 2  ;;  %v1647_v4 = vrot.slane %v4109_v28, 1  ;;  %v1409_v47 = vsel %vm529_vm5, %v1408_v51, %v1407_v43  ;;  %v4194_v51 = vld [vmem:[%s3644_s9 + $0xf8] sm:$0xff]  ;;  %s2652_s9 = sshll.u32 %s4652_s8, 4  ;;  %s4679_s9 = int_to_ptr.vmem [resolvable:$true] %s2652_s9 }
  0x70   : > { %v1527_v48 = vsel %vm520_vm2, %v1526_v40, %v1525_v44  ;;  %v1649_v49 = vrot.slane %v4085_v21, 7  ;;  %v1651_v50 = vrot.slane %v4088_v22, 6  ;;  %v1536_v53 = vrot.slane %v4123_v16, 1  ;;  %s3401_s21 = scalar_lea.vmem %s4679_s9, 1024  ;;  %p3408_p6 = scmp.lt.s32.totalorder %s4679_s9, %s3406_s26 }
  0x71   : > { %v1648_v54 = vsel %vm517_vm1, %v4082_v18, %v1647_v4  ;;  %v1653_v6 = vrot.slane %v4097_v52, 5  ;;  %v1655_v57 = vrot.slane %v4100_v9, 4  ;;  %v1657_v58 = vrot.slane %v4112_v14, 3  ;;  %v475_v4 = vld [vmem:[%s3679_s19 + $0x168] sm:$0xff]  ;;  %p3402_p2 = scmp.ne.s32.totalorder %s4679_s9, %s3401_s21  ;;  %p3409_p7 = scmp.lt.s32.totalorder %s3407_s27, %s3401_s21 }
  0x72   : > { %v1650_v56 = vsel %vm520_vm2, %v1649_v49, %v1648_v54  ;;  %v1659_v59 = vrot.slane %v4123_v16, 2  ;;  %v1538_v3 = vrot.slane %v4151_v55, 7  ;;  %v1540_v1 = vrot.slane %v4154_v32, 6 }
  0x73   : > { %3232 = vmatpush3.bf16.xpose.msk.msra.mxu0 %vm3683_vm8, %v3991_v2  ;;  %v1529_v2 = vsel %vm523_vm3, %v1528_v42, %v1527_v48  ;;  %v1652_v36 = vsel %vm523_vm3, %v1651_v50, %v1650_v56  ;;  %v1542_v17 = vrot.slane %v4164_v34, 5  ;;  %v1544_v19 = vrot.slane %v4167_v35, 4  ;;  %v473_v48 = vld [vmem:[%s3679_s19 + $0x158] sm:$0xff]  ;;  %p3403_p3 = pnand %p3402_p2, %p3546_p5  ;;  %p3410_p8 = por %p3409_p7, %p3408_p6 }
  0x74   : > { %3244 = vmatpush3.bf16.xpose.msk.msra.mxu1 %vm3683_vm8, %v3995_v7  ;;  %3247 = vmatprep.subr.msk.bf16.mxu0 %vm3683_vm8, %v4067_v63  ;;  %v1411_v7 = vsel %vm532_vm6, %v1410_v39, %v1409_v47  ;;  %v1531_v33 = vsel %vm526_vm4, %v1530_v31, %v1529_v2  ;;  %v1654_v62 = vsel %vm526_vm4, %v1653_v6, %v1652_v36  ;;  %v1548_v39 = vrot.slane %v4182_v0, 2  ;;  %v471_v31 = vld [vmem:[%s3679_s19 + $0x148] sm:$0xff]  ;;  %v472_v47 = vld [vmem:[%s3679_s19 + $0x150] sm:$0xff] }
  0x75   : > { %3259 = vmatprep.subr.msk.bf16.mxu1 %vm3683_vm8, %v4091_v23  ;;  %v1533_v11 = vsel %vm529_vm5, %v1532_v38, %v1531_v33  ;;  %v1412_v5 = vsel %vm535_vm7, %v3745_v20, %v1411_v7  ;;  %v1656_v12 = vsel %vm529_vm5, %v1655_v57, %v1654_v62  ;;  %v1539_v25 = vsel %vm517_vm1, %v1538_v3, %v4179_v41  ;;  %v474_v38 = vld [vmem:[%s3679_s19 + $0x160] sm:$0xff]  ;;  %p3404_p4 = pneg %p3403_p3 }
  0x76   : > { %v1535_v61 = vsel %vm532_vm6, %v1534_v45, %v1533_v11  ;;  %v1658_v24 = vsel %vm532_vm6, %v1657_v58, %v1656_v12  ;;  %v1546_v20 = vrot.slane %v4174_v60, 3  ;;  %v1541_v13 = vsel %vm520_vm2, %v1540_v1, %v1539_v25 }
  0x77   : > { %v1537_v10 = vsel %vm535_vm7, %v1536_v53, %v1535_v61  ;;  %v1660_v26 = vsel %vm535_vm7, %v1659_v59, %v1658_v24  ;;  %v1661_v15 = vrot.slane %v4179_v41, 1  ;;  %v1543_v29 = vsel %vm523_vm3, %v1542_v17, %v1541_v13  ;;  %p3411_p11 = pnand %p3410_p8, %p3404_p4 }
  0x78   : > { %v1665_v40 = vrot.slane %v4164_v34, 6  ;;  %v1667_v42 = vrot.slane %v4167_v35, 5  ;;  %v1550_v43 = vrot.slane %v4194_v51, 1  ;;  %v1669_v45 = vrot.slane %v4174_v60, 4 }
  0x79   : > { %v1662_v44 = vsel %vm517_vm1, %v4151_v55, %v1661_v15  ;;  %v1671_v50 = vrot.slane %v4182_v0, 3  ;;  %v1673_v54 = vrot.slane %v4194_v51, 2  ;;  %v3269_v6 = vpack.c.bf16 %v471_v31, %v470_v8 }
  0x7a   : > { %3048 = vmatmul.mubr.msk.f32.vlgmr.msra.gmra.mrb[6].mxu0 %vm551_vm0, %v4064_v37  ;;  %v1663_v37 = vrot.slane %v4154_v32, 7  ;;  %v3281_v33 = vpack.c.bf16 %v475_v4, %v474_v38  ;;  %v4242_v56 = vpack.c.bf16 %v473_v48, %v472_v47  ;;  %v1770_v57 = vrot.slane %v4109_v28, 2 }
  0x7b   : > { %3059 = vmatmul.mubr.msk.f32.vlgmr.msra.gmra.mrb[6].mxu1 %vm551_vm0, %v1412_v5  ;;  %3250 = vmatpush3.bf16.xpose.msk.msra.mxu0 %vm3683_vm8, %v4067_v63  ;;  %v1545_v63 = vsel %vm526_vm4, %v1544_v19, %v1543_v29  ;;  %v1771_v58 = vrot.slane %v4082_v18, 1  ;;  %v1774_v59 = vrot.slane %v4088_v22, 7  ;;  %v1776_v62 = vrot.slane %v4097_v52, 6 }
  0x7c   : > { %3262 = vmatpush3.bf16.xpose.msk.msra.mxu1 %vm3683_vm8, %v4091_v23  ;;  %3253 = vmatprep.subr.msk.bf16.mxu0 %vm3683_vm8, %v4106_v27  ;;  %v1547_v23 = vsel %vm529_vm5, %v1546_v20, %v1545_v63  ;;  %v1664_v49 = vsel %vm520_vm2, %v1663_v37, %v1662_v44  ;;  %v1778_v3 = vrot.slane %v4100_v9, 5  ;;  %v1780_v1 = vrot.slane %v4112_v14, 4 }
  0x7d   : > { %3265 = vmatprep.subr.msk.bf16.mxu1 %vm3683_vm8, %v4120_v30  ;;  %3069 = vmatprep.mubr.msk.f32.mxu0 %vm551_vm0, %v1537_v10  ;;  %v1549_v2 = vsel %vm532_vm6, %v1548_v39, %v1547_v23  ;;  %v1666_v53 = vsel %vm523_vm3, %v1665_v40, %v1664_v49  ;;  %v1772_v5 = vsel %vm517_vm1, %v1771_v58, %v1770_v57  ;;  %v1782_v12 = vrot.slane %v4123_v16, 3  ;;  %v476_v40 = vld [vmem:[%s3679_s19 + $0x170] sm:$0xff]  ;;  %v479_v57 = vld [vmem:[%s3679_s19 + $0x188] sm:$0xff] }
  0x7e   : > { %3080 = vmatprep.mubr.msk.f32.mxu1 %vm551_vm0, %v1660_v26  ;;  %v1668_v7 = vsel %vm526_vm4, %v1667_v42, %v1666_v53  ;;  %v1551_v11 = vsel %vm535_vm7, %v1550_v43, %v1549_v2  ;;  %v1784_v17 = vrot.slane %v4179_v41, 2  ;;  %v1785_v19 = vrot.slane %v4151_v55, 1  ;;  %v477_v42 = vld [vmem:[%s3679_s19 + $0x178] sm:$0xff] }
  0x7f   : > { %v1670_v36 = vsel %vm529_vm5, %v1669_v45, %v1668_v7  ;;  %v1773_v24 = vsel %vm520_vm2, %v4085_v21, %v1772_v5  ;;  %v1788_v25 = vrot.slane %v4164_v34, 7  ;;  %v1790_v20 = vrot.slane %v4167_v35, 6  ;;  %v478_v7 = vld [vmem:[%s3679_s19 + $0x180] sm:$0xff] }
  0x80   : > { %v1672_v61 = vsel %vm532_vm6, %v1671_v50, %v1670_v36  ;;  %v1786_v26 = vsel %vm517_vm1, %v1785_v19, %v1784_v17  ;;  %v1792_v13 = vrot.slane %v4174_v60, 5  ;;  %v1794_v39 = vrot.slane %v4182_v0, 4 }
  0x81   : > { %v1674_v10 = vsel %vm535_vm7, %v1673_v54, %v1672_v61  ;;  %v1787_v29 = vsel %vm520_vm2, %v4154_v32, %v1786_v26  ;;  %v1894_v37 = vrot.slane %v4082_v18, 2  ;;  %v1896_v38 = vrot.slane %v4085_v21, 1 }
  0x82   : > { %v1789_v31 = vsel %vm523_vm3, %v1788_v25, %v1787_v29  ;;  %v1899_v63 = vrot.slane %v4097_v52, 7  ;;  %v1901_v4 = vrot.slane %v4100_v9, 6  ;;  %v1796_v48 = vrot.slane %v4194_v51, 3  ;;  %v480_v29 = vld [vmem:[%s3679_s19 + $0x190] sm:$0xff] }
  0x83   : > { %3256 = vmatpush3.bf16.xpose.msk.msra.mxu0 %vm3683_vm8, %v4106_v27  ;;  %v1775_v27 = vsel %vm523_vm3, %v1774_v59, %v1773_v24  ;;  %v1791_v44 = vsel %vm526_vm4, %v1790_v20, %v1789_v31  ;;  %v1903_v49 = vrot.slane %v4112_v14, 5  ;;  %v3287_v50 = vpack.c.bf16 %v477_v42, %v476_v40 }
  0x84   : > { %3268 = vmatpush3.bf16.xpose.msk.msra.mxu1 %vm3683_vm8, %v4120_v30  ;;  %3271 = vmatprep.subr.msk.bf16.mxu0 %vm3683_vm8, %v3269_v6  ;;  %v1777_v15 = vsel %vm526_vm4, %v1776_v62, %v1775_v27  ;;  %v1893_v30 = vrot.slane %v4109_v28, 3  ;;  %v1793_v47 = vsel %vm529_vm5, %v1792_v13, %v1791_v44  ;;  %v1905_v54 = vrot.slane %v4123_v16, 4  ;;  %v482_v62 = vld [vmem:[%s3679_s19 + $0x1a0] sm:$0xff] }
  0x85   : > { %3283 = vmatprep.subr.msk.bf16.mxu1 %vm3683_vm8, %v3281_v33  ;;  %v1779_v8 = vsel %vm529_vm5, %v1778_v3, %v1777_v15  ;;  %v1795_v2 = vsel %vm532_vm6, %v1794_v39, %v1793_v47  ;;  %v1907_v59 = vrot.slane %v4179_v41, 3  ;;  %v483_v3 = vld [vmem:[%s3679_s19 + $0x1a8] sm:$0xff]  ;;  %v1910_v5 = vrot.slane %v4154_v32, 1 }
  0x86   : > { %v1781_v43 = vsel %vm532_vm6, %v1780_v1, %v1779_v8  ;;  %v1895_v45 = vsel %vm517_vm1, %v1894_v37, %v1893_v30  ;;  %v1908_v1 = vrot.slane %v4151_v55, 2  ;;  %v1913_v17 = vrot.slane %v4167_v35, 7  ;;  %v481_v30 = vld [vmem:[%s3679_s19 + $0x198] sm:$0xff] }
  0x87   : > { %v1897_v23 = vsel %vm520_vm2, %v1896_v38, %v1895_v45  ;;  %v1783_v36 = vsel %vm535_vm7, %v1782_v12, %v1781_v43  ;;  %v4322_v12 = vpack.c.bf16 %v479_v57, %v478_v7  ;;  %v2016_v24 = vrot.slane %v4109_v28, 4 }
  0x88   : > { %v1898_v53 = vsel %vm523_vm3, %v4088_v22, %v1897_v23  ;;  %v1909_v19 = vsel %vm517_vm1, %v1908_v1, %v1907_v59  ;;  %v4333_v25 = vpack.c.bf16 %v483_v3, %v482_v62  ;;  %v2017_v27 = vrot.slane %v4082_v18, 3  ;;  %v484_v62 = vld [vmem:[%s3679_s19 + $0x1b0] sm:$0xff]  ;;  %v485_v3 = vld [vmem:[%s3679_s19 + $0x1b8] sm:$0xff] }
  0x89   : > { %v1900_v58 = vsel %vm526_vm4, %v1899_v63, %v1898_v53  ;;  %v1911_v20 = vsel %vm520_vm2, %v1910_v5, %v1909_v19  ;;  %v2019_v26 = vrot.slane %v4085_v21, 2  ;;  %v1917_v39 = vrot.slane %v4182_v0, 5 }
  0x8a   : > { %3070 = vmatmul.mubr.msk.f32.vlgmr.msra.gmra.mrb[8].mxu0 %vm551_vm0, %v1551_v11  ;;  %v1902_v61 = vsel %vm529_vm5, %v1901_v4, %v1900_v58  ;;  %v4319_v11 = vsel %vm535_vm7, %v1796_v48, %v1795_v2  ;;  %v1912_v13 = vsel %vm523_vm3, %v4164_v34, %v1911_v20  ;;  %v1919_v15 = vrot.slane %v4194_v51, 4 }
  0x8b   : > { %3081 = vmatmul.mubr.msk.f32.vlgmr.msra.gmra.mrb[8].mxu1 %vm551_vm0, %v1674_v10  ;;  %3274 = vmatpush3.bf16.xpose.msk.msra.mxu0 %vm3683_vm8, %v3269_v6  ;;  %v1904_v6 = vsel %vm532_vm6, %v1903_v49, %v1902_v61  ;;  %v1915_v10 = vrot.slane %v4174_v60, 6  ;;  %v2021_v37 = vrot.slane %v4088_v22, 1  ;;  %v1914_v40 = vsel %vm526_vm4, %v1913_v17, %v1912_v13 }
  0x8c   : > { %3286 = vmatpush3.bf16.xpose.msk.msra.mxu1 %vm3683_vm8, %v3281_v33  ;;  %3277 = vmatprep.subr.msk.bf16.mxu0 %vm3683_vm8, %v4242_v56  ;;  %v1906_v33 = vsel %vm535_vm7, %v1905_v54, %v1904_v6  ;;  %v2018_v42 = vsel %vm517_vm1, %v2017_v27, %v2016_v24  ;;  %v2024_v8 = vrot.slane %v4100_v9, 7  ;;  %v2139_v31 = vrot.slane %v4109_v28, 5 }
  0x8d   : > { %3289 = vmatprep.subr.msk.bf16.mxu1 %vm3683_vm8, %v3287_v50  ;;  %3091 = vmatprep.mubr.msk.f32.mxu0 %vm551_vm0, %v1783_v36  ;;  %v1916_v38 = vsel %vm529_vm5, %v1915_v10, %v1914_v40  ;;  %v2020_v63 = vsel %vm520_vm2, %v2019_v26, %v2018_v42  ;;  %v2140_v43 = vrot.slane %v4082_v18, 4  ;;  %v2142_v44 = vrot.slane %v4085_v21, 3 }
  0x8e   : > { %3102 = vmatprep.mubr.msk.f32.mxu1 %vm551_vm0, %v1906_v33  ;;  %v4353_v45 = vpack.c.bf16 %v481_v30, %v480_v29  ;;  %v2022_v4 = vsel %vm523_vm3, %v2021_v37, %v2020_v63  ;;  %v2144_v47 = vrot.slane %v4088_v22, 2  ;;  %v2146_v48 = vrot.slane %v4097_v52, 1 }
  0x8f   : > { %v1918_v23 = vsel %vm532_vm6, %v1917_v39, %v1916_v38  ;;  %v2023_v49 = vsel %vm526_vm4, %v4097_v52, %v2022_v4  ;;  %v2026_v2 = vrot.slane %v4112_v14, 6  ;;  %v2141_v53 = vsel %vm517_vm1, %v2140_v43, %v2139_v31  ;;  %v487_v4 = vld [vmem:[%s3679_s19 + $0x1c8] sm:$0xff] }
  0x90   : > { %v2143_v54 = vsel %vm520_vm2, %v2142_v44, %v2141_v53  ;;  %v2149_v7 = vrot.slane %v4112_v14, 7  ;;  %v2030_v57 = vrot.slane %v4179_v41, 4  ;;  %v2028_v36 = vrot.slane %v4123_v16, 5  ;;  %v486_v44 = vld [vmem:[%s3679_s19 + $0x1c0] sm:$0xff] }
  0x91   : > { %v2031_v58 = vrot.slane %v4151_v55, 3  ;;  %v2033_v59 = vrot.slane %v4154_v32, 2  ;;  %v1920_v61 = vsel %vm535_vm7, %v1919_v15, %v1918_v23  ;;  %v2151_v5 = vrot.slane %v4123_v16, 6 }
  0x92   : > { %v2035_v6 = vrot.slane %v4164_v34, 1  ;;  %v2038_v10 = vrot.slane %v4174_v60, 7  ;;  %v2153_v27 = vrot.slane %v4179_v41, 5  ;;  %v2154_v26 = vrot.slane %v4151_v55, 4 }
  0x93   : > { %3280 = vmatpush3.bf16.xpose.msk.msra.mxu0 %vm3683_vm8, %v4242_v56  ;;  %v2025_v56 = vsel %vm529_vm5, %v2024_v8, %v2023_v49  ;;  %v2032_v19 = vsel %vm517_vm1, %v2031_v58, %v2030_v57  ;;  %v3311_v13 = vpack.c.bf16 %v485_v3, %v484_v62  ;;  %v2156_v15 = vrot.slane %v4154_v32, 3  ;;  %v490_v49 = vld [vmem:[%s3679_s19 + $0x1e0] sm:$0xff] }
  0x94   : > { %3292 = vmatpush3.bf16.xpose.msk.msra.mxu1 %vm3683_vm8, %v3287_v50  ;;  %3295 = vmatprep.subr.msk.bf16.mxu0 %vm3683_vm8, %v4322_v12  ;;  %v2145_v50 = vsel %vm523_vm3, %v2144_v47, %v2143_v54  ;;  %v2027_v17 = vsel %vm532_vm6, %v2026_v2, %v2025_v56  ;;  %v2034_v20 = vsel %vm520_vm2, %v2033_v59, %v2032_v19  ;;  %v2158_v29 = vrot.slane %v4164_v34, 2  ;;  %v491_v2 = vld [vmem:[%s3679_s19 + $0x1e8] sm:$0xff]  ;;  %v488_v59 = vld [vmem:[%s3679_s19 + $0x1d0] sm:$0xff] }
  0x95   : > { %3307 = vmatprep.subr.msk.bf16.mxu1 %vm3683_vm8, %v4333_v25  ;;  %v2147_v1 = vsel %vm526_vm4, %v2146_v48, %v2145_v50  ;;  %v2036_v39 = vsel %vm523_vm3, %v2035_v6, %v2034_v20  ;;  %v2029_v30 = vsel %vm535_vm7, %v2028_v36, %v2027_v17  ;;  %v2155_v40 = vsel %vm517_vm1, %v2154_v26, %v2153_v27 }
  0x96   : > { %v2148_v33 = vsel %vm529_vm5, %v4100_v9, %v2147_v1  ;;  %v2037_v37 = vsel %vm526_vm4, %v4167_v35, %v2036_v39  ;;  %v2160_v42 = vrot.slane %v4167_v35, 1  ;;  %v2040_v8 = vrot.slane %v4182_v0, 6 }
  0x97   : > { %v2150_v24 = vsel %vm532_vm6, %v2149_v7, %v2148_v33  ;;  %v2157_v31 = vsel %vm520_vm2, %v2156_v15, %v2155_v40  ;;  %v2039_v38 = vsel %vm529_vm5, %v2038_v10, %v2037_v37  ;;  %v2163_v63 = vrot.slane %v4182_v0, 7 }
  0x98   : > { %v2262_v43 = vrot.slane %v4109_v28, 6  ;;  %v2263_v47 = vrot.slane %v4082_v18, 5  ;;  %v2042_v48 = vrot.slane %v4194_v51, 5  ;;  %v2265_v53 = vrot.slane %v4085_v21, 4 }
  0x99   : > { %v2267_v56 = vrot.slane %v4088_v22, 3  ;;  %v2041_v54 = vsel %vm532_vm6, %v2040_v8, %v2039_v38  ;;  %v2165_v7 = vrot.slane %v4194_v51, 6  ;;  %v2269_v36 = vrot.slane %v4097_v52, 2 }
  0x9a   : > { %3092 = vmatmul.mubr.msk.f32.vlgmr.msra.gmra.mrb[10].mxu0 %vm551_vm0, %v4319_v11  ;;  %v2152_v11 = vsel %vm535_vm7, %v2151_v5, %v2150_v24  ;;  %v2264_v57 = vsel %vm517_vm1, %v2263_v47, %v2262_v43  ;;  %v3317_v58 = vpack.c.bf16 %v487_v4, %v486_v44  ;;  %v2271_v3 = vrot.slane %v4100_v9, 1 }
  0x9b   : > { %3103 = vmatmul.mubr.msk.f32.vlgmr.msra.gmra.mrb[10].mxu1 %vm551_vm0, %v1920_v61  ;;  %3298 = vmatpush3.bf16.xpose.msk.msra.mxu0 %vm3683_vm8, %v4322_v12  ;;  %v2159_v12 = vsel %vm523_vm3, %v2158_v29, %v2157_v31  ;;  %v489_v61 = vld [vmem:[%s3679_s19 + $0x1d8] sm:$0xff]  ;;  %v2266_v62 = vsel %vm520_vm2, %v2265_v53, %v2264_v57  ;;  %v3329_v1 = vpack.c.bf16 %v491_v2, %v490_v49  ;;  %v2276_v6 = vrot.slane %v4179_v41, 6  ;;  %v4536_v53 = vld [vmem:[%s394_s29] sm:$0xff] }
  0x9c   : > { %3310 = vmatpush3.bf16.xpose.msk.msra.mxu1 %vm3683_vm8, %v4333_v25  ;;  %3301 = vmatprep.subr.msk.bf16.mxu0 %vm3683_vm8, %v4353_v45  ;;  %v2161_v25 = vsel %vm526_vm4, %v2160_v42, %v2159_v12  ;;  %v2268_v5 = vsel %vm523_vm3, %v2267_v56, %v2266_v62  ;;  %v2277_v17 = vrot.slane %v4151_v55, 5  ;;  %v2043_v33 = vsel %vm535_vm7, %v2042_v48, %v2041_v54 }
  0x9d   : > { %3313 = vmatprep.subr.msk.bf16.mxu1 %vm3683_vm8, %v3311_v13  ;;  %3113 = vmatprep.mubr.msk.f32.mxu0 %vm551_vm0, %v2029_v30  ;;  %v2162_v23 = vsel %vm529_vm5, %v4174_v60, %v2161_v25  ;;  %v2270_v19 = vsel %vm526_vm4, %v2269_v36, %v2268_v5  ;;  %v4464_v24 = vpack.c.bf16 %v489_v61, %v488_v59  ;;  %v2385_v20 = vrot.slane %v4109_v28, 7  ;;  %v492_v30 = vld [vmem:[%s3679_s19 + $0x1f0] sm:$0xff] }
  0x9e   : > { %3124 = vmatprep.mubr.msk.f32.mxu1 %vm551_vm0, %v2152_v11  ;;  %v2164_v50 = vsel %vm532_vm6, %v2163_v63, %v2162_v23  ;;  %v2386_v27 = vrot.slane %v4082_v18, 6  ;;  %v2272_v26 = vsel %vm529_vm5, %v2271_v3, %v2270_v19  ;;  %v2388_v39 = vrot.slane %v4085_v21, 5  ;;  %v493_v21 = vld [vmem:[%s3679_s19 + $0x1f8] sm:$0xff]  ;;  %s4689_s19 = scalar_lea.hbm %s4747_s3, %s2876_s10 }
  0x9f   : > { %v2166_v10 = vsel %vm535_vm7, %v2165_v7, %v2164_v50  ;;  %v2390_v15 = vrot.slane %v4088_v22, 4  ;;  %v2274_v18 = vrot.slane %v4123_v16, 7  ;;  %v2278_v28 = vsel %vm517_vm1, %v2277_v17, %v2276_v6 }
  0xa0   : > { %v2392_v29 = vrot.slane %v4097_v52, 3  ;;  %v2281_v22 = vrot.slane %v4164_v34, 3  ;;  %v2394_v40 = vrot.slane %v4100_v9, 2  ;;  %v2396_v42 = vrot.slane %v4112_v14, 1 }
  0xa1   : > { %v2273_v11 = vsel %vm532_vm6, %v4112_v14, %v2272_v26  ;;  %v2399_v31 = vrot.slane %v4179_v41, 7  ;;  %v2400_v38 = vrot.slane %v4151_v55, 6  ;;  %v2402_v63 = vrot.slane %v4154_v32, 5 }
  0xa2   : > { %v2404_v43 = vrot.slane %v4164_v34, 4  ;;  %v3335_v9 = vpack.c.bf16 %v493_v21, %v492_v30  ;;  %v2275_v41 = vsel %vm535_vm7, %v2274_v18, %v2273_v11  ;;  %v2283_v55 = vrot.slane %v4167_v35, 2 }
  0xa3   : > { %3304 = vmatpush3.bf16.xpose.msk.msra.mxu0 %vm3683_vm8, %v4353_v45  ;;  %v2279_v45 = vrot.slane %v4154_v32, 4  ;;  %v2401_v14 = vsel %vm517_vm1, %v2400_v38, %v2399_v31  ;;  %v2406_v47 = vrot.slane %v4167_v35, 3  ;;  %v496_v48 = vlaneseq }
  0xa4   : > { %3316 = vmatpush3.bf16.xpose.msk.msra.mxu1 %vm3683_vm8, %v3311_v13  ;;  %3319 = vmatprep.subr.msk.bf16.mxu0 %vm3683_vm8, %v3317_v58  ;;  %v2387_v13 = vsel %vm517_vm1, %v2386_v27, %v2385_v20  ;;  %v2403_v4 = vsel %vm520_vm2, %v2402_v63, %v2401_v14  ;;  %v2408_v2 = vrot.slane %v4174_v60, 2  ;;  %v2410_v57 = vrot.slane %v4182_v0, 1 }
  0xa5   : > { %3331 = vmatprep.subr.msk.bf16.mxu1 %vm3683_vm8, %v3329_v1  ;;  %v2389_v37 = vsel %vm520_vm2, %v2388_v39, %v2387_v13  ;;  %v2280_v52 = vsel %vm520_vm2, %v2279_v45, %v2278_v28  ;;  %v2405_v23 = vsel %vm523_vm3, %v2404_v43, %v2403_v4  ;;  %v4531_v35 = vshrl.u32 %v496_v48, 7 }
  0xa6   : > { %v2391_v8 = vsel %vm523_vm3, %v2390_v15, %v2389_v37  ;;  %v2282_v32 = vsel %vm523_vm3, %v2281_v22, %v2280_v52  ;;  %v2407_v56 = vsel %vm526_vm4, %v2406_v47, %v2405_v23 }
  0xa7   : > { %v2393_v12 = vsel %vm526_vm4, %v2392_v29, %v2391_v8  ;;  %v2284_v49 = vsel %vm526_vm4, %v2283_v55, %v2282_v32  ;;  %v498_v54 = vsub.s32 0, %v4531_v35  ;;  %v2409_v50 = vsel %vm529_vm5, %v2408_v2, %v2407_v56 }
  0xa8   : > { %v2395_v25 = vsel %vm529_vm5, %v2394_v40, %v2393_v12  ;;  %v2411_v59 = vsel %vm532_vm6, %v2410_v57, %v2409_v50  ;;  %v1014_v61 = vsub.s32 4, %v4531_v35  ;;  %v768_v17 = vsub.s32 2, %v4531_v35 }
  0xa9   : > { %v2397_v44 = vsel %vm532_vm6, %v2396_v42, %v2395_v25  ;;  %v499_v36 = vrot.slane %v4536_v53, %v498_v54  ;;  %v4560_v5 = vrot.slane %v495_v46, %v498_v54  ;;  %v891_v19 = vsub.s32 3, %v4531_v35 }
  0xaa   : > { %3114 = vmatmul.mubr.msk.f32.vlgmr.msra.gmra.mrb[12].mxu0 %vm551_vm0, %v2043_v33  ;;  %v2398_v34 = vsel %vm535_vm7, %v4123_v16, %v2397_v44  ;;  %v2285_v16 = vrot.slane %v4174_v60, 1  ;;  %v2288_v60 = vrot.slane %v4194_v51, 7  ;;  %v1015_v3 = vrot.slane %v4536_v53, %v1014_v61 }
  0xab   : > { %3125 = vmatmul.mubr.msk.f32.vlgmr.msra.gmra.mrb[12].mxu1 %vm551_vm0, %v2166_v10  ;;  %3322 = vmatpush3.bf16.xpose.msk.msra.mxu0 %vm3683_vm8, %v3317_v58  ;;  %v4566_v33 = vrot.slane %v495_v46, %v768_v17  ;;  %v4569_v10 = vrot.slane %v495_v46, %v891_v19  ;;  %v1260_v27 = vsub.s32 6, %v4531_v35  ;;  %v1383_v45 = vsub.s32 7, %v4531_v35 }
  0xac   : > { %3334 = vmatpush3.bf16.xpose.msk.msra.mxu1 %vm3683_vm8, %v3329_v1  ;;  %3325 = vmatprep.subr.msk.bf16.mxu0 %vm3683_vm8, %v4464_v24  ;;  %v2286_v7 = vsel %vm529_vm5, %v2285_v16, %v2284_v49  ;;  %v2412_v1 = vsel %vm535_vm7, %v4194_v51, %v2411_v59  ;;  %v4571_v51 = vrot.slane %v495_v46, %v1014_v61 }
  0xad   : > { %3337 = vmatprep.subr.msk.bf16.mxu1 %vm3683_vm8, %v3335_v9  ;;  %3135 = vmatprep.mubr.msk.f32.mxu0 %vm551_vm0, %v2275_v41  ;;  %v2287_v58 = vsel %vm532_vm6, %v4182_v0, %v2286_v7  ;;  %v645_v0 = vsub.s32 1, %v4531_v35  ;;  %v4577_v26 = vrot.slane %v495_v46, %v1260_v27  ;;  %v4580_v39 = vrot.slane %v495_v46, %v1383_v45 }
  0xae   : > { %3146 = vmatprep.mubr.msk.f32.mxu1 %vm551_vm0, %v2398_v34  ;;  %v2289_v62 = vsel %vm535_vm7, %v2288_v60, %v2287_v58  ;;  %v769_v40 = vrot.slane %v4536_v53, %v768_v17  ;;  %v892_v42 = vrot.slane %v4536_v53, %v891_v19  ;;  %v1261_v47 = vrot.slane %v4536_v53, %v1260_v27 }
  0xaf   : > { %v4563_v6 = vrot.slane %v495_v46, %v645_v0  ;;  %v646_v15 = vrot.slane %v4536_v53, %v645_v0  ;;  %v1384_v48 = vrot.slane %v4536_v53, %v1383_v45 }
  0xb3   : > { %3328 = vmatpush3.bf16.xpose.msk.msra.mxu0 %vm3683_vm8, %v4464_v24  ;;  %v1137_v24 = vsub.s32 5, %v4531_v35 }
  0xb4   : > { %3340 = vmatpush3.bf16.xpose.msk.msra.mxu1 %vm3683_vm8, %v3335_v9 }
  0xb5   : > { %v4574_v20 = vrot.slane %v495_v46, %v1137_v24  ;;  %v1138_v9 = vrot.slane %v4536_v53, %v1137_v24 }
  0xba   : > { %3136 = vmatmul.mubr.msk.f32.vlgmr.msra.gmra.mrb[14].mxu0 %vm551_vm0, %v2289_v62 }
  0xbb   : > { %3147 = vmatmul.mubr.msk.f32.vlgmr.msra.gmra.mrb[14].mxu1 %vm551_vm0, %v2412_v1 }
 0x11d   : > { %v2983_v18 = vpop.f32.mrb[0].mxu0 }
 0x11e   : > { %v4583_v28 = vadd.f32 %v2983_v18, %v499_v36  ;;  %v2994_v13 = vpop.f32.mrb[0].mxu1  ;;  %v634_v29 = vpop.f32.mrb[1].mxu0 }
 0x11f   : > { %v763_v30 = vadd.f32 %v2994_v13, %v646_v15  ;;  %v4585_v21 = vadd.f32 %v634_v29, %v499_v36  ;;  %v757_v22 = vpop.f32.mrb[1].mxu1 }
 0x120   : > { %v758_v37 = vadd.f32 %v757_v22, %v646_v15 }
 0x121   : > { %2508 = vrot.lane.b32.xlu0 %v763_v30, %s3481_s30 }
 0x125   : > { %2506 = vrot.lane.b32.xlu0 %v758_v37, %s3481_s30 }
 0x12d   : > { %v3005_v11 = vpop.f32.mrb[2].mxu0 }
 0x12e   : > { %v886_v8 = vadd.f32 %v3005_v11, %v769_v40  ;;  %v880_v31 = vpop.f32.mrb[3].mxu0  ;;  %v3016_v38 = vpop.f32.mrb[2].mxu1 }
 0x12f   : > { %v881_v52 = vadd.f32 %v880_v31, %v769_v40  ;;  %v1003_v12 = vpop.f32.mrb[3].mxu1  ;;  %v1009_v63 = vadd.f32 %v3016_v38, %v892_v42 }
 0x130   : > { %2516 = vrot.lane.b32.xlu1 %v886_v8, %s3482_s4  ;;  %v1004_v43 = vadd.f32 %v1003_v12, %v892_v42 }
 0x131   : > { %2514 = vrot.lane.b32.xlu0 %v881_v52, %s3482_s4 }
 0x134   : > { %2524 = vrot.lane.b32.xlu1 %v1009_v63, %s3483_s5 }
 0x135   : > { %2522 = vrot.lane.b32.xlu0 %v1004_v43, %s3483_s5 }
 0x13d   : > { %v3027_v25 = vpop.f32.mrb[4].mxu0 }
 0x13e   : > { %v4596_v14 = vadd.f32 %v3027_v25, %v1015_v3  ;;  %v3038_v41 = vpop.f32.mrb[4].mxu1  ;;  %v1126_v55 = vpop.f32.mrb[5].mxu0 }
 0x13f   : > { %v1255_v44 = vadd.f32 %v3038_v41, %v1138_v9  ;;  %v4598_v4 = vadd.f32 %v1126_v55, %v1015_v3  ;;  %v1249_v32 = vpop.f32.mrb[5].mxu1 }
 0x140   : > { %v1250_v34 = vadd.f32 %v1249_v32, %v1138_v9 }
 0x141   : > { %2532 = vrot.lane.b32.xlu1 %v1255_v44, %s3481_s30 }
 0x145   : > { %2530 = vrot.lane.b32.xlu1 %v1250_v34, %s3481_s30 }
 0x14d   : > { %v3049_v23 = vpop.f32.mrb[6].mxu0 }
 0x14e   : > { %v1378_v16 = vadd.f32 %v3049_v23, %v1261_v47  ;;  %v1372_v35 = vpop.f32.mrb[7].mxu0  ;;  %v3060_v49 = vpop.f32.mrb[6].mxu1 }
 0x14f   : > { %v1373_v2 = vadd.f32 %v1372_v35, %v1261_v47  ;;  %v1495_v56 = vpop.f32.mrb[7].mxu1  ;;  %v1501_v54 = vadd.f32 %v3060_v49, %v1384_v48 }
 0x150   : > { %2540 = vrot.lane.b32.xlu1 %v1378_v16, %s3482_s4  ;;  %v1496_v7 = vadd.f32 %v1495_v56, %v1384_v48 }
 0x151   : > { %2538 = vrot.lane.b32.xlu0 %v1373_v2, %s3482_s4 }
 0x154   : > { %2548 = vrot.lane.b32.xlu1 %v1501_v54, %s3483_s5 }
 0x155   : > { %2546 = vrot.lane.b32.xlu0 %v1496_v7, %s3483_s5 }
 0x15d   : > { %v3071_v57 = vpop.f32.mrb[8].mxu0 }
 0x15e   : > { %v4609_v36 = vadd.f32 %v3071_v57, %v4560_v5  ;;  %v3082_v53 = vpop.f32.mrb[8].mxu1  ;;  %v1634_v50 = vpop.f32.mrb[9].mxu0 }
 0x15f   : > { %v1763_v60 = vadd.f32 %v3082_v53, %v4563_v6  ;;  %v4613_v58 = vadd.f32 %v1634_v50, %v4560_v5  ;;  %v1757_v59 = vpop.f32.mrb[9].mxu1 }
 0x160   : > { %v1758_v61 = vadd.f32 %v1757_v59, %v4563_v6 }
 0x161   : > { %2556 = vrot.lane.b32.xlu1 %v1763_v60, %s3481_s30 }
 0x162   : > { %2554 = vrot.lane.b32.xlu0 %v1758_v61, %s3481_s30 }
 0x16d   : > { %v3093_v62 = vpop.f32.mrb[10].mxu0 }
 0x16e   : > { %v1886_v3 = vadd.f32 %v3093_v62, %v4566_v33  ;;  %v1880_v1 = vpop.f32.mrb[11].mxu0  ;;  %v3104_v46 = vpop.f32.mrb[10].mxu1 }
 0x16f   : > { %v1881_v0 = vadd.f32 %v1880_v1, %v4566_v33  ;;  %v2009_v17 = vadd.f32 %v3104_v46, %v4569_v10  ;;  %v2003_v19 = vpop.f32.mrb[11].mxu1 }
 0x170   : > { %2564 = vrot.lane.b32.xlu1 %v1886_v3, %s3482_s4  ;;  %v2004_v5 = vadd.f32 %v2003_v19, %v4569_v10 }
 0x171   : > { %2562 = vrot.lane.b32.xlu0 %v1881_v0, %s3482_s4 }
 0x174   : > { %2572 = vrot.lane.b32.xlu1 %v2009_v17, %s3483_s5 }
 0x175   : > { %2570 = vrot.lane.b32.xlu0 %v2004_v5, %s3483_s5 }
 0x17d   : > { %v3115_v6 = vpop.f32.mrb[12].mxu0 }
 0x17e   : > { %v4627_v24 = vadd.f32 %v3115_v6, %v4571_v51  ;;  %v3126_v27 = vpop.f32.mrb[12].mxu1  ;;  %v2126_v45 = vpop.f32.mrb[13].mxu0 }
 0x17f   : > { %v2255_v33 = vadd.f32 %v3126_v27, %v4574_v20  ;;  %v4631_v15 = vadd.f32 %v2126_v45, %v4571_v51  ;;  %v2249_v18 = vpop.f32.mrb[13].mxu1 }
 0x180   : > { %v2250_v10 = vadd.f32 %v2249_v18, %v4574_v20 }
 0x181   : > { %2580 = vrot.lane.b32.xlu1 %v2255_v33, %s3481_s30 }
 0x182   : > { %2578 = vrot.lane.b32.xlu0 %v2250_v10, %s3481_s30 }
 0x18d   : > { %v3137_v13 = vpop.f32.mrb[14].mxu0 }
 0x18e   : > { %v2378_v29 = vadd.f32 %v3137_v13, %v4577_v26  ;;  %v2372_v30 = vpop.f32.mrb[15].mxu0  ;;  %v3148_v22 = vpop.f32.mrb[14].mxu1 }
 0x18f   : > { %v2373_v37 = vadd.f32 %v2372_v30, %v4577_v26  ;;  %v2501_v40 = vadd.f32 %v3148_v22, %v4580_v39  ;;  %v2495_v42 = vpop.f32.mrb[15].mxu1 }
 0x190   : > { %2588 = vrot.lane.b32.xlu1 %v2378_v29, %s3482_s4  ;;  %v2496_v51 = vadd.f32 %v2495_v42, %v4580_v39 }
 0x191   : > { %2586 = vrot.lane.b32.xlu0 %v2373_v37, %s3482_s4 }
 0x193   : > { %v2509_v20 = vpop.permute.xlu0 %2508 }
 0x194   : > { %2596 = vrot.lane.b32.xlu1 %v2501_v40, %s3483_s5  ;;  %v2602_v31 = vsel %vm2600_vm9, %v4583_v28, %v2509_v20 }
 0x195   : > { %2594 = vrot.lane.b32.xlu0 %v2496_v51, %s3483_s5 }
 0x197   : > { %v2507_v11 = vpop.permute.xlu0 %2506 }
 0x198   : > { %v2601_v39 = vsel %vm2600_vm9, %v4585_v21, %v2507_v11 }
 0x1a2   : > { %v2517_v8 = vpop.permute.xlu1 %2516 }
 0x1a3   : > { %v2515_v26 = vpop.permute.xlu0 %2514  ;;  %v2605_v38 = vsel %vm2603_vm10, %v2602_v31, %v2517_v8 }
 0x1a4   : > { %v2604_v12 = vsel %vm2603_vm10, %v2601_v39, %v2515_v26 }
 0x1a6   : > { %v2525_v52 = vpop.permute.xlu1 %2524 }
 0x1a7   : > { %v2608_v63 = vsel %vm2606_vm11, %v2605_v38, %v2525_v52  ;;  %v2523_v43 = vpop.permute.xlu0 %2522 }
 0x1a8   : > { %2631 = vst [vmem:[%s4652_s8 + $0x20] sm:$0xff] %v2608_v63  ;;  %v2607_v28 = vsel %vm2606_vm11, %v2604_v12, %v2523_v43 }
 0x1a9   : > { %2627 = vst [vmem:[%s4652_s8] sm:$0xff] %v2607_v28 }
 0x1b3   : > { %v2533_v9 = vpop.permute.xlu1 %2532 }
 0x1b4   : > { %v2610_v55 = vsel %vm2600_vm9, %v4596_v14, %v2533_v9 }
 0x1b7   : > { %v2531_v21 = vpop.permute.xlu1 %2530 }
 0x1b8   : > { %v2609_v44 = vsel %vm2600_vm9, %v4598_v4, %v2531_v21 }
 0x1c2   : > { %v2541_v25 = vpop.permute.xlu1 %2540 }
 0x1c3   : > { %v2539_v41 = vpop.permute.xlu0 %2538  ;;  %v2612_v32 = vsel %vm2603_vm10, %v2610_v55, %v2541_v25 }
 0x1c4   : > { %v2611_v47 = vsel %vm2603_vm10, %v2609_v44, %v2539_v41 }
 0x1c6   : > { %v2549_v34 = vpop.permute.xlu1 %2548 }
 0x1c7   : > { %v2614_v48 = vsel %vm2606_vm11, %v2612_v32, %v2549_v34  ;;  %v2547_v23 = vpop.permute.xlu0 %2546 }
 0x1c8   : > { %2632 = vst [vmem:[%s4652_s8 + $0x28] sm:$0xff] %v2614_v48  ;;  %v2613_v16 = vsel %vm2606_vm11, %v2611_v47, %v2547_v23 }
 0x1c9   : > { %2628 = vst [vmem:[%s4652_s8 + $0x8] sm:$0xff] %v2613_v16 }
 0x1d3   : > { %v2557_v35 = vpop.permute.xlu1 %2556 }
 0x1d4   : > { %v2555_v14 = vpop.permute.xlu0 %2554  ;;  %v2616_v4 = vsel %vm2600_vm9, %v4609_v36, %v2557_v35 }
 0x1d5   : > { %v2615_v56 = vsel %vm2600_vm9, %v4613_v58, %v2555_v14 }
 0x1e2   : > { %v2565_v49 = vpop.permute.xlu1 %2564 }
 0x1e3   : > { %v2563_v2 = vpop.permute.xlu0 %2562  ;;  %v2618_v54 = vsel %vm2603_vm10, %v2616_v4, %v2565_v49 }
 0x1e4   : > { %v2617_v57 = vsel %vm2603_vm10, %v2615_v56, %v2563_v2 }
 0x1e6   : > { %v2573_v7 = vpop.permute.xlu1 %2572 }
 0x1e7   : > { %v2620_v53 = vsel %vm2606_vm11, %v2618_v54, %v2573_v7  ;;  %v2571_v50 = vpop.permute.xlu0 %2570 }
 0x1e8   : > { %2633 = vst [vmem:[%s4652_s8 + $0x30] sm:$0xff] %v2620_v53  ;;  %v2619_v60 = vsel %vm2606_vm11, %v2617_v57, %v2571_v50 }
 0x1e9   : > { %2629 = vst [vmem:[%s4652_s8 + $0x10] sm:$0xff] %v2619_v60 }
 0x1f3   : > { %v2581_v59 = vpop.permute.xlu1 %2580 }
 0x1f4   : > { %v2579_v61 = vpop.permute.xlu0 %2578  ;;  %v2622_v62 = vsel %vm2600_vm9, %v4627_v24, %v2581_v59 }
 0x1f5   : > { %v2621_v3 = vsel %vm2600_vm9, %v4631_v15, %v2579_v61 }
 0x202   : > { %v2589_v36 = vpop.permute.xlu1 %2588 }
 0x203   : > { %v2587_v58 = vpop.permute.xlu0 %2586  ;;  %v2624_v1 = vsel %vm2603_vm10, %v2622_v62, %v2589_v36 }
 0x204   : > { %v2623_v0 = vsel %vm2603_vm10, %v2621_v3, %v2587_v58 }
 0x206   : > { %v2597_v46 = vpop.permute.xlu1 %2596 }
 0x207   : > { %v2626_v17 = vsel %vm2606_vm11, %v2624_v1, %v2597_v46  ;;  %v2595_v19 = vpop.permute.xlu0 %2594 }
 0x208   : > { %2634 = vst [vmem:[%s4652_s8 + $0x38] sm:$0xff] %v2626_v17  ;;  %v2625_v5 = vsel %vm2606_vm11, %v2623_v0, %v2595_v19 }
 0x209   : > { %2630 = vst [vmem:[%s4652_s8 + $0x18] sm:$0xff] %v2625_v5 }
 0x20a   : > { %3414 = shalt.err (!%p3411_p11)
}
 0x20b   : > { %s3415_s28 = scalar_lea.hbm %s4689_s19, 1024  ;;  %s3419_s5 = scalar_lea.hbm %s4747_s3, 2048 }
 0x20c   : > { %p3416_p12 = scmp.ne.s32.totalorder %s4689_s19, %s3415_s28  ;;  %p3420_p1 = scmp.lt.u32.totalorder %s4689_s19, %s4747_s3 }
 0x20d   : > { %p3421_p2 = scmp.lt.u32.totalorder %s3419_s5, %s3415_s28  ;;  %p3423_p4 = scmp.lt.u32.totalorder %s3415_s28, %s4689_s19 }
 0x20e   : > { %p3417_p13 = pnand %p3416_p12, %p3546_p5 }
 0x20f   : > { %p3422_p3 = por %p3421_p2, %p3420_p1 }
 0x210   : > { %p3418_p0 = pneg %p3417_p13 }
 0x211   : > { %p3424_p6 = por %p3423_p4, %p3422_p3 }
 0x213   : > { %p3425_p7 = pnand %p3424_p6, %p3418_p0 }
 0x215   : > { %3428 = shalt.err (!%p3425_p7)
}
 0x216   : > { %s3485_s10 = smov 512   ;;  %s3486_s11 = smov 1024  }
 0x217   : > { %3341 = dma.vmem_to_hbm [thread:$0]  (%p3546_p5), %s4679_s9, 1024, %s4689_s19, %s2636_s15, %s3485_s10, %s3486_s11, %s3481_s30  }
 0x218 PF: > { %s2667_s18 = sand.u32 1, %s3459_s12   ;;  %p3344_p8 = pnand %p2761_p10, %p3557_p9 }
 0x219   : > { %s2668_s21 = scalar_lea.sflag [#allocation4], %s2667_s18 }
 0x21a   : > { %3454 = dma.done.wait (!%p3344_p8), %s2668_s21, 1024  }
 0x21b   : > { %3456 = vsyncadd (!%p3344_p8), %s2668_s21, 4294966272  ;;  %s16_s17 = sadd.s32 1, %s3479_s17   ;;  %s4753_s12 = smov %s3463_s13 }
 0x21c   : > { %p13_p11 = scmp.ge.s32.totalorder %s16_s17, 4   ;;  %s4754_s13 = smov %s3467_s14 }
 0x21d   : > { %s4755_s14 = smov %s3555_s24  ;;  %s4756_s15 = smov %s3475_s16 }
 0x21e   : > { %s4757_s16 = smov %s4759_s20  ;;  %15 = sbr.rel (!%p13_p11) target bundleno = 4 (0x4), region = 116 }
 0x225   :  { %2673 = vsyncpa [#allocation4], 1 }
 0x226   :  { %2675 = vsyncpa [#allocation4 + $0x1], 1 }

</bundles_post_ra>
